<compile_context>
chip_gen: v7x
topology: tpu7x:2x2x1
jax: 0.10.0
libtpu: 0.0.40
codegen_flags: <defaults>
</compile_context>

<pallas_src>
import functools
import numpy as np
import jax
import jax.numpy as jnp
from jax import lax
from jax.experimental import pallas as pl
from jax.experimental.pallas import tpu as pltpu


def _trilerp_kernel(lut_ref, x_ref, o_ref, *, dim, dim_pad, inv_binsize):
    # lut_ref: (3*dim_pad, dim*dim_pad) f32,
    #          row c*dim_pad + r, col b*dim_pad + g  ==  lut[c, b, g, r]
    #          (rows r>=dim and cols g>=dim are zero padding)
    # x_ref:   (3, TP) f32, rows = (r, g, b) pixel values in [0, 1]
    # o_ref:   (3, TP) f32 output channels
    tp = x_ref.shape[-1]
    inv_bin = jnp.float32(inv_binsize)

    t_r = x_ref[0:1, :] * inv_bin                                  # (1, TP)
    t_g = x_ref[1:2, :] * inv_bin
    t_b = x_ref[2:3, :] * inv_bin

    # Per-axis linear "hat" weights on small (dim[_pad], TP) arrays only.
    coord = lax.broadcasted_iota(jnp.int32, (dim_pad, 1), 0).astype(jnp.float32)
    w_r = jnp.maximum(0.0, 1.0 - jnp.abs(t_r - coord))             # (dim_pad, TP)
    w_g = jnp.maximum(0.0, 1.0 - jnp.abs(t_g - coord))             # (dim_pad, TP)
    w_b = jnp.maximum(0.0, 1.0 - jnp.abs(t_b - coord[:dim, :]))    # (dim,     TP)

    # Joint (b, g) weight via outer product; inner axis is dim_pad (multiple of 8)
    # so the merge to (dim*dim_pad, TP) is a tile-aligned, copy-free reshape.
    w_gb = (w_b[:, None, :] * w_g[None, :, :]).reshape(dim * dim_pad, tp)

    # One fused MXU matmul contracts the (b, g) axes for all 3 channels at once.
    m = jnp.dot(lut_ref[...], w_gb,
                preferred_element_type=jnp.float32,
                precision=lax.Precision.HIGHEST)                   # (3*dim_pad, TP)

    # Contract the r axis on the VPU/XLU; channel slabs start at 8-aligned rows.
    for c in range(3):
        mc = m[c * dim_pad:(c + 1) * dim_pad, :]                   # (dim_pad, TP)
        o_ref[c:c + 1, :] = jnp.sum(mc * w_r, axis=0, keepdims=True)


def _round_up(v, m):
    return ((v + m - 1) // m) * m


def _vmem_budgets():
    """(vmem_limit_bytes, temp_budget_bytes) chosen per TPU generation."""
    cap = 64 * 1024 * 1024  # conservative fallback = v7x per-TensorCore VMEM
    try:
        info = pltpu.get_tpu_info()
        cap = int(getattr(info, "vmem_capacity_bytes", cap)) or cap
    except Exception:
        pass
    if cap <= 64 * 1024 * 1024:
        # v7x: 64 MiB physical; leave headroom for the resident LUT + pipeline bufs.
        return min(48 * 1024 * 1024, cap - 16 * 1024 * 1024), 16 * 1024 * 1024
    # v5e / v6e: 128 MiB physical; larger tiles amortize per-step overhead.
    return min(96 * 1024 * 1024, cap - 32 * 1024 * 1024), 48 * 1024 * 1024


def _choose_tile_pixels(P, dim, temp_budget_bytes):
    dim_pad = _round_up(dim, 8)
    # Peak live f32 per pixel column: w_gb (+ one matmul-operand copy) on
    # dim*dim_pad rows, the fused result on 3*dim_pad rows, three small hats,
    # and the double-buffered x / out pipeline tiles.
    per_pixel = (2 * dim * dim_pad + 6 * dim_pad + 32) * 4
    tp = temp_budget_bytes // max(per_pixel, 1)
    tp = max(128, min(2048, (tp // 128) * 128))
    # Prefer an even number (>=2) of grid steps so both v7x TensorCores get work
    # with no idle tail step (harmless on single-TC v5e/v6e).
    steps = -(-P // tp)
    if steps < 2:
        steps = 2
    if steps % 2:
        steps += 1
    tp = min(tp, max(128, _round_up(-(-P // steps), 128)))
    return int(tp)


def trilinear_interpolation(lut, x, *, tile_pixels=None):
    """Forward of TrilinearInterpolation. Returns (lut, output) like the PyTorch op."""
    batch, C, H, W = x.shape
    assert C == 3, "input must have 3 colour channels (NCHW)"
    dim = int(lut.shape[-1])
    dim_pad = _round_up(dim, 8)
    binsize = 1.000001 / (dim - 1)

    # lut (c, b, g, r) -> (c, r, b, g), zero-pad r and g to dim_pad, flatten to a
    # single 8-aligned (3*dim_pad, dim*dim_pad) matmul LHS.
    lut_t = jnp.transpose(lut.astype(jnp.float32), (0, 3, 1, 2))   # (c, r, b, g)
    lut_t = jnp.pad(lut_t, ((0, 0), (0, dim_pad - dim), (0, 0), (0, dim_pad - dim)))
    lut_k = lut_t.reshape(3 * dim_pad, dim * dim_pad)

    # NCHW -> channel-major (3, P), pixels on the lane axis.
    P = batch * H * W
    x_cp = jnp.transpose(x, (1, 0, 2, 3)).reshape(3, P).astype(jnp.float32)

    vmem_limit, temp_budget = _vmem_budgets()
    if tile_pixels is None:
        tp = _choose_tile_pixels(P, dim, temp_budget)
    else:
        tp = max(128, _round_up(int(tile_pixels), 128))

    P_pad = _round_up(P, tp)
    if P_pad != P:
        x_cp = jnp.pad(x_cp, ((0, 0), (0, P_pad - P)))

    grid = (P_pad // tp,)
    out = pl.pallas_call(
        functools.partial(_trilerp_kernel, dim=dim, dim_pad=dim_pad,
                          inv_binsize=1.0 / binsize),
        out_shape=jax.ShapeDtypeStruct((3, P_pad), jnp.float32),
        grid_spec=pltpu.PrefetchScalarGridSpec(
            num_scalar_prefetch=0,
            grid=grid,
            in_specs=[
                # LUT: constant index_map -> fetched once, stays VMEM-resident.
                pl.BlockSpec((3 * dim_pad, dim * dim_pad), lambda p: (0, 0)),
                pl.BlockSpec((3, tp), lambda p: (0, p)),           # pixel tile
            ],
            out_specs=pl.BlockSpec((3, tp), lambda p: (0, p)),     # slim 3-row output
        ),
        compiler_params=pltpu.CompilerParams(
            dimension_semantics=("parallel",),
            vmem_limit_bytes=int(vmem_limit),
        ),
    )(lut_k, x_cp)

    out = out[:, :P].reshape(3, batch, H, W).transpose(1, 0, 2, 3)
    return lut, out


def _ref_trilerp(lut, x):
    """Pure-JAX reference reproducing the CUDA floor/frac 8-corner interpolation."""
    dim = lut.shape[-1]
    binsize = 1.000001 / (dim - 1)
    lut_flat = lut.reshape(3, -1)
    r, g, b = x[:, 0], x[:, 1], x[:, 2]
    rid = jnp.floor(r / binsize).astype(jnp.int32)
    gid = jnp.floor(g / binsize).astype(jnp.int32)
    bid = jnp.floor(b / binsize).astype(jnp.int32)
    rd = r / binsize - rid
    gd = g / binsize - gid
    bd = b / binsize - bid
    outs = []
    for c in range(3):
        acc = jnp.zeros_like(r)
        for dr in (0, 1):
            for dg in (0, 1):
                for db in (0, 1):
                    w = ((rd if dr else 1.0 - rd) *
                         (gd if dg else 1.0 - gd) *
                         (bd if db else 1.0 - bd))
                    idx = (rid + dr) + (gid + dg) * dim + (bid + db) * dim * dim
                    acc = acc + w * lut_flat[c][idx]
        outs.append(acc)
    return jnp.stack(outs, axis=1)


if __name__ == "__main__":
    key = jax.random.PRNGKey(0)
    k_lut, k_x = jax.random.split(key)

    dim = 9                      # small 3D LUT: (3, dim, dim, dim)
    batch, H, W = 2, 16, 16      # x: (2, 3, 16, 16) NCHW

    # Deterministic LUT: identity mapping + small perturbation.
    grid_1d = jnp.linspace(0.0, 1.0, dim)
    rr = jnp.broadcast_to(grid_1d[None, None, :], (dim, dim, dim))
    gg = jnp.broadcast_to(grid_1d[None, :, None], (dim, dim, dim))
    bb = jnp.broadcast_to(grid_1d[:, None, None], (dim, dim, dim))
    lut = jnp.stack([rr, gg, bb], axis=0).astype(jnp.float32)
    lut = lut + 0.05 * jax.random.normal(k_lut, lut.shape, dtype=jnp.float32)

    x = jax.random.uniform(k_x, (batch, 3, H, W), dtype=jnp.float32)

    lut_out, y = trilinear_interpolation(lut, x)
    y = jax.block_until_ready(y)

    y_ref = _ref_trilerp(lut, x)
    np.testing.assert_allclose(np.asarray(y), np.asarray(y_ref), atol=1e-4, rtol=1e-4)
    assert lut_out.shape == lut.shape and y.shape == x.shape

    print("KERNEL_OK")
</pallas_src>

<mosaic_0001>
module attributes {stable_mosaic.version = 11 : i64} {
  func.func @_trilerp_kernel(%arg0: i32, %arg1: memref<48x144xf32, #tpu.memory_space<vmem>>, %arg2: memref<3x256xf32, #tpu.memory_space<vmem>>, %arg3: memref<3x256xf32, #tpu.memory_space<vmem>>) attributes {dimension_semantics = [#tpu.dimension_semantics<parallel>], iteration_bounds = array<i64: 2>, scalar_prefetch = 0 : i64, scratch_operands = 0 : i64, tpu.core_type = #tpu.core_type<tc>, window_params = [{pipeline_mode = #tpu.pipeline_mode<synchronous>, transform_indices = @transform_0, window_bounds = array<i64: 48, 144>}, {transform_indices = @transform_1, window_bounds = array<i64: 3, 256>}, {transform_indices = @transform_2, window_bounds = array<i64: 3, 256>}]} {
    %c0 = arith.constant 0 : index
    %c0_0 = arith.constant 0 : index
    %0 = vector.load %arg2[%c0, %c0_0] : memref<3x256xf32, #tpu.memory_space<vmem>>, vector<1x256xf32>
    %cst = arith.constant 7.99999189 : f32
    %1 = vector.broadcast %cst : f32 to vector<1x256xf32>
    %2 = arith.mulf %0, %1 : vector<1x256xf32>
    %c1 = arith.constant 1 : index
    %c0_1 = arith.constant 0 : index
    %3 = vector.load %arg2[%c1, %c0_1] : memref<3x256xf32, #tpu.memory_space<vmem>>, vector<1x256xf32>
    %cst_2 = arith.constant 7.99999189 : f32
    %4 = vector.broadcast %cst_2 : f32 to vector<1x256xf32>
    %5 = arith.mulf %3, %4 : vector<1x256xf32>
    %c2 = arith.constant 2 : index
    %c0_3 = arith.constant 0 : index
    %6 = vector.load %arg2[%c2, %c0_3] : memref<3x256xf32, #tpu.memory_space<vmem>>, vector<1x256xf32>
    %cst_4 = arith.constant 7.99999189 : f32
    %7 = vector.broadcast %cst_4 : f32 to vector<1x256xf32>
    %8 = arith.mulf %6, %7 : vector<1x256xf32>
    %9 = tpu.iota {dimensions = array<i32: 0>} : vector<16x1xi32>
    %10 = arith.sitofp %9 : vector<16x1xi32> to vector<16x1xf32>
    %11 = vector.broadcast %2 : vector<1x256xf32> to vector<16x256xf32>
    %12 = vector.broadcast %10 : vector<16x1xf32> to vector<16x256xf32>
    %13 = arith.subf %11, %12 : vector<16x256xf32>
    %14 = math.absf %13 : vector<16x256xf32>
    %cst_5 = arith.constant 1.000000e+00 : f32
    %15 = vector.broadcast %cst_5 : f32 to vector<16x256xf32>
    %16 = arith.subf %15, %14 : vector<16x256xf32>
    %cst_6 = arith.constant 0.000000e+00 : f32
    %17 = vector.broadcast %cst_6 : f32 to vector<16x256xf32>
    %18 = arith.maximumf %17, %16 : vector<16x256xf32>
    %19 = vector.broadcast %5 : vector<1x256xf32> to vector<16x256xf32>
    %20 = vector.broadcast %10 : vector<16x1xf32> to vector<16x256xf32>
    %21 = arith.subf %19, %20 : vector<16x256xf32>
    %22 = math.absf %21 : vector<16x256xf32>
    %cst_7 = arith.constant 1.000000e+00 : f32
    %23 = vector.broadcast %cst_7 : f32 to vector<16x256xf32>
    %24 = arith.subf %23, %22 : vector<16x256xf32>
    %cst_8 = arith.constant 0.000000e+00 : f32
    %25 = vector.broadcast %cst_8 : f32 to vector<16x256xf32>
    %26 = arith.maximumf %25, %24 : vector<16x256xf32>
    %27 = vector.extract_strided_slice %10 {offsets = [0, 0], sizes = [9, 1], strides = [1, 1]} : vector<16x1xf32> to vector<9x1xf32>
    %28 = vector.broadcast %8 : vector<1x256xf32> to vector<9x256xf32>
    %29 = vector.broadcast %27 : vector<9x1xf32> to vector<9x256xf32>
    %30 = arith.subf %28, %29 : vector<9x256xf32>
    %31 = math.absf %30 : vector<9x256xf32>
    %cst_9 = arith.constant 1.000000e+00 : f32
    %32 = vector.broadcast %cst_9 : f32 to vector<9x256xf32>
    %33 = arith.subf %32, %31 : vector<9x256xf32>
    %cst_10 = arith.constant 0.000000e+00 : f32
    %34 = vector.broadcast %cst_10 : f32 to vector<9x256xf32>
    %35 = arith.maximumf %34, %33 : vector<9x256xf32>
    %36 = vector.shape_cast %35 : vector<9x256xf32> to vector<9x1x256xf32>
    %37 = vector.shape_cast %26 : vector<16x256xf32> to vector<1x16x256xf32>
    %38 = vector.broadcast %36 : vector<9x1x256xf32> to vector<9x16x256xf32>
    %39 = vector.broadcast %37 : vector<1x16x256xf32> to vector<9x16x256xf32>
    %40 = arith.mulf %38, %39 : vector<9x16x256xf32>
    %41 = vector.shape_cast %40 : vector<9x16x256xf32> to vector<144x256xf32>
    %c0_11 = arith.constant 0 : index
    %c0_12 = arith.constant 0 : index
    %42 = vector.load %arg1[%c0_11, %c0_12] : memref<48x144xf32, #tpu.memory_space<vmem>>, vector<48x144xf32>
    %cst_13 = arith.constant dense<0.000000e+00> : vector<48x256xf32>
    %43 = tpu.matmul %42, %41, %cst_13 {dimension_numbers = #tpu.dot_dimension_numbers<[1], [0], [0], [1], [0, 0, 1, 1], [], []>, precision = #tpu.contract_precision<fp32>} : vector<48x144xf32>, vector<144x256xf32>, vector<48x256xf32> -> vector<48x256xf32>
    %44 = vector.extract_strided_slice %43 {offsets = [0, 0], sizes = [16, 256], strides = [1, 1]} : vector<48x256xf32> to vector<16x256xf32>
    %45 = arith.mulf %44, %18 : vector<16x256xf32>
    %cst_14 = arith.constant dense<0.000000e+00> : vector<256xf32>
    %46 = vector.multi_reduction <add>, %45, %cst_14 [0] : vector<16x256xf32> to vector<256xf32>
    %47 = vector.shape_cast %46 : vector<256xf32> to vector<1x256xf32>
    %c0_15 = arith.constant 0 : index
    %c0_16 = arith.constant 0 : index
    %48 = vector.load %arg3[%c0_15, %c0_16] : memref<3x256xf32, #tpu.memory_space<vmem>>, vector<1x256xf32>
    tpu.vector_store %arg3[%c0_15, %c0_16], %47 {strides = array<i32>} : memref<3x256xf32, #tpu.memory_space<vmem>>, vector<1x256xf32>,
    %49 = vector.extract_strided_slice %43 {offsets = [16, 0], sizes = [16, 256], strides = [1, 1]} : vector<48x256xf32> to vector<16x256xf32>
    %50 = arith.mulf %49, %18 : vector<16x256xf32>
    %cst_17 = arith.constant dense<0.000000e+00> : vector<256xf32>
    %51 = vector.multi_reduction <add>, %50, %cst_17 [0] : vector<16x256xf32> to vector<256xf32>
    %52 = vector.shape_cast %51 : vector<256xf32> to vector<1x256xf32>
    %c1_18 = arith.constant 1 : index
    %c0_19 = arith.constant 0 : index
    %53 = vector.load %arg3[%c1_18, %c0_19] : memref<3x256xf32, #tpu.memory_space<vmem>>, vector<1x256xf32>
    tpu.vector_store %arg3[%c1_18, %c0_19], %52 {strides = array<i32>} : memref<3x256xf32, #tpu.memory_space<vmem>>, vector<1x256xf32>,
    %54 = vector.extract_strided_slice %43 {offsets = [32, 0], sizes = [16, 256], strides = [1, 1]} : vector<48x256xf32> to vector<16x256xf32>
    %55 = arith.mulf %54, %18 : vector<16x256xf32>
    %cst_20 = arith.constant dense<0.000000e+00> : vector<256xf32>
    %56 = vector.multi_reduction <add>, %55, %cst_20 [0] : vector<16x256xf32> to vector<256xf32>
    %57 = vector.shape_cast %56 : vector<256xf32> to vector<1x256xf32>
    %c2_21 = arith.constant 2 : index
    %c0_22 = arith.constant 0 : index
    %58 = vector.load %arg3[%c2_21, %c0_22] : memref<3x256xf32, #tpu.memory_space<vmem>>, vector<1x256xf32>
    tpu.vector_store %arg3[%c2_21, %c0_22], %57 {strides = array<i32>} : memref<3x256xf32, #tpu.memory_space<vmem>>, vector<1x256xf32>,
    return
  }
  func.func @transform_0(%arg0: i32) -> (i32, i32) {
    %c0_i32 = arith.constant 0 : i32
    %c0_i32_0 = arith.constant 0 : i32
    %c0_i32_1 = arith.constant 0 : i32
    return %c0_i32, %c0_i32_0 : i32, i32
  }
  func.func @transform_1(%arg0: i32) -> (i32, i32) {
    %c0_i32 = arith.constant 0 : i32
    %c0_i32_0 = arith.constant 0 : i32
    return %c0_i32, %arg0 : i32, i32
  }
  func.func @transform_2(%arg0: i32) -> (i32, i32) {
    %c0_i32 = arith.constant 0 : i32
    %c0_i32_0 = arith.constant 0 : i32
    return %c0_i32, %arg0 : i32, i32
  }
}

</mosaic_0001>

<bundles_post_ra>
// kernel: tpu_custom_call.1
= control target key start
LH: loop header
LB: loop body
LE: loop exit
PB: predicated region body
PF: predicated region fallthrough
CT: control target
= control target key end

     0   :  { %7 = vsyncpa [#allocation3], 0  ;;  %s3238_s0 = inlined_call_operand.hbm [shape: f32[48,144], index: 0, kind: input, shape index: {}]   ;;  %s3239_s1 = inlined_call_operand.hbm [shape: f32[3,512], index: 1, kind: input, shape index: {}]   ;;  %s3240_s2 = inlined_call_operand.hbm [shape: f32[3,512], index: 2, kind: output, shape index: {}]  }
   0x1   :  { %8 = vsyncpa [#allocation6], 0 }
   0x2   :  { %10 = vsyncpa [#allocation6 + $0x1], 0 }
   0x3   :  { %11 = vsyncpa [#allocation4], 0 }
   0x4   :  { %13 = vsyncpa [#allocation4 + $0x1], 0  ;;  %s2450_s9 = smov 0   ;;  %s2452_s10 = smov 0  }
   0x5   :  { %s2454_s11 = smov 0   ;;  %s2456_s12 = smov 0  }
   0x6 LB: > { %s2471_s13 = sadd.s32 4294967295, %s2427_s12   ;;  %s1941_s14 = sadd.s32 4294967294, %s2427_s12   ;;  %s2427_s12 = sphi %s2456_s12, %s3406_s12   ;;  %s2423_s11 = sphi %s2454_s11, %s3405_s11   ;;  %s2419_s10 = sphi %s2452_s10, %s3404_s10   ;;  %s2415_s9 = sphi %s2450_s9, %s3403_s9  }
   0x7   : > { %p60_p0 = scmp.ne.s32.totalorder %s2419_s10, %s2415_s9  ;;  %p3241_p1 = scmp.eq.s32.totalorder %s2471_s13, 0 }
   0x8   : > { %p90_p3 = scmp.eq.s32.totalorder %s1941_s14, 1  ;;  %p1942_p5 = scmp.ge.s32.totalorder %s2427_s12, 1 }
   0x9   : > { %p2480_p4 = por %p3241_p1, %p60_p0  ;;  %p97_p7 = scmp.lt.s32.totalorder %s2427_s12, 3 }
   0xa   : > { %p2485_p6 = por %p90_p3, %p60_p0  ;;  %s2429_s18 = smov [#allocation2]  }
   0xb   : > { %s3296_s15 = scalar_select %p2480_p4, 1, 0 }
   0xc   : > { %s3297_s16 = scalar_select %p2485_p6, 1, 0 }
   0xd   : > { %p2490_p8 = pnand %p1942_p5, %p97_p7  ;;  %s109_s19 = sshll.u32 %s2429_s18, 4  ;;  %s2494_s19 = int_to_ptr.vmem [resolvable:$true] %s109_s19 }
   0xe   : > { %s2506_s21 = sadd.s32 1, %s2427_s12   ;;  %s47_s22 = sadd.s32 1, %s2423_s11 }
   0xf   : > { %s3298_s17 = scalar_select %p2490_p8, 1, 0 }
  0x10   : > { %p2247_p9 = pneg %p2490_p8  ;;  %s44_s23 = ssub.s32 %s2427_s12, %s2506_s21 }
  0x11   : > { %s2299_s26 = scalar_lea.hbm %s3238_s0, 1536 }
  0x12   : > { %p2501_p11 = pnand %p2247_p9, %p3241_p1  ;;  %p2300_p12 = scmp.ne.s32.totalorder %s3238_s0, %s2299_s26 }
  0x13   : > { %p2306_p5 = scmp.lt.u32.totalorder %s2299_s26, %s3238_s0 }
  0x14   : > { %p2301_p13 = pneg %p2501_p11 }
  0x16   : > { %p2302_p0 = pnand %p2301_p13, %p2300_p12 }
  0x18   : > { %p2303_p3 = pneg %p2302_p0 }
  0x1a   : > { %p2308_p7 = pnand %p2306_p5, %p2303_p3 }
  0x1c   : > { %2311 = shalt.err (!%p2308_p7)
}
  0x1d   : > { %s2312_s3 = scalar_lea.vmem %s2494_s19, 1536  ;;  %p2320_p2 = scmp.lt.s32.totalorder %s2494_s19, %s2494_s19 }
  0x1e   : > { %p2313_p9 = scmp.ne.s32.totalorder %s2494_s19, %s2312_s3  ;;  %p2321_p6 = scmp.lt.s32.totalorder %s2312_s3, %s2312_s3 }
  0x20   : > { %p2315_p10 = pnand %p2313_p9, %p2301_p13  ;;  %p2322_p4 = por %p2321_p6, %p2320_p2 }
  0x22   : > { %p2316_p1 = pneg %p2315_p10 }
  0x24   : > { %p2323_p8 = pnand %p2322_p4, %p2316_p1 }
  0x26   : > { %2326 = shalt.err (!%p2323_p8)
}
  0x27   : > { %s2430_s4 = smov 256   ;;  %s2431_s5 = smov 16  }
  0x28   : > { %2250 = dma.hbm_to_vmem [thread:$0]  (!%p2501_p11), %s3238_s0, 1536, %s2494_s19, [#allocation3], %s2430_s4, %s2430_s4, %s2431_s5  }
  0x29   : > { %p45_p2 = scmp.eq.s32.totalorder %s44_s23, 0  ;;  %p54_p1 = scmp.ne.s32.totalorder %s2423_s11, %s2419_s10 }
  0x2a   : > { %p55_p4 = scmp.eq.s32.totalorder %s2427_s12, 0  ;;  %p2260_p6 = scmp.lt.s32.totalorder %s2427_s12, 2 }
  0x2b   : > { %s2537_s8 = scalar_select %p45_p2, %s2423_s11, %s47_s22  }
  0x2c   : > { %p56_p8 = por %p55_p4, %p54_p1  ;;  %p3300_p10 = scmp.eq.s32.totalorder %s2471_s13, 1 }
  0x2d   : > { %s123_s18 = sand.u32 1, %s2423_s11   ;;  %s1961_s24 = sshll.u32 %s2427_s12, 7 }
  0x2e   : > { %p2541_p12 = por %p3300_p10, %p54_p1  ;;  %s1945_s25 = sshll.u32 %s123_s18, 3 }
  0x2f   : > { %s2550_s27 = scalar_lea.hbm %s3239_s1, %s1961_s24  ;;  %s127_s19 = scalar_lea.vmem [#allocation5], %s1945_s25 }
  0x30   : > { %s135_s22 = sshll.u32 %s127_s19, 4  ;;  %p2552_p11 = pnand %p2260_p6, %p56_p8  ;;  %s2556_s22 = int_to_ptr.vmem [resolvable:$true] %s135_s22 }
  0x31   : > { %s124_s28 = scalar_lea.sflag [#allocation6], %s123_s18  ;;  %s2327_s29 = scalar_lea.hbm %s2550_s27, 128 }
  0x32   : > { %p2328_p13 = scmp.ne.s32.totalorder %s2550_s27, %s2327_s29  ;;  %p2329_p0 = pneg %p2552_p11 }
  0x33   : > { %s2332_s4 = scalar_lea.hbm %s3239_s1, 256  ;;  %p2333_p7 = scmp.lt.u32.totalorder %s2550_s27, %s3239_s1 }
  0x34   : > { %p2330_p3 = pnand %p2329_p0, %p2328_p13  ;;  %p2334_p9 = scmp.lt.u32.totalorder %s2332_s4, %s2327_s29 }
  0x35   : > { %p2336_p1 = scmp.lt.u32.totalorder %s2327_s29, %s2550_s27 }
  0x36   : > { %p2331_p5 = pneg %p2330_p3  ;;  %p2335_p2 = por %p2334_p9, %p2333_p7 }
  0x38   : > { %p2337_p4 = por %p2336_p1, %p2335_p2 }
  0x3a   : > { %p2338_p6 = pnand %p2337_p4, %p2331_p5 }
  0x3c   : > { %2341 = shalt.err (!%p2338_p6)
}
  0x3d   : > { %s2342_s7 = scalar_lea.vmem %s2556_s22, 128  ;;  %s2432_s18 = smov [#allocation5]  }
  0x3e   : > { %p2343_p8 = scmp.ne.s32.totalorder %s2556_s22, %s2342_s7  ;;  %s2347_s24 = sshll.u32 %s2432_s18, 4  ;;  %s2348_s24 = int_to_ptr.vmem [resolvable:$false] %s2347_s24 }
  0x3f   : > { %s2349_s25 = scalar_lea.vmem %s2348_s24, 256  ;;  %p2350_p3 = scmp.lt.s32.totalorder %s2556_s22, %s2348_s24 }
  0x40   : > { %p2345_p10 = pnand %p2343_p8, %p2329_p0  ;;  %p2351_p7 = scmp.lt.s32.totalorder %s2349_s25, %s2342_s7 }
  0x42   : > { %p2346_p13 = pneg %p2345_p10  ;;  %p2352_p9 = por %p2351_p7, %p2350_p3 }
  0x44   : > { %p2353_p2 = pnand %p2352_p9, %p2346_p13 }
  0x46   : > { %2356 = shalt.err (!%p2353_p2)
}
  0x47   : > { %2254 = dma.hbm_to_vmem [thread:$0]  (!%p2552_p11), %s2550_s27, 128, %s2556_s22, %s124_s28  }
  0x48   : > { %p3303_p5 = scmp.ne.s32.totalorder %s3298_s17, 0 }
  0x4a   : > { %144 = sbr.rel (%p3303_p5) target bundleno = 515 (0x203), region = 28 }
  0x51   : > { %p3304_p0 = scmp.eq.s32.totalorder %s2471_s13, 0 }
  0x53   : > { %2402 = dma.done.wait (%p3304_p0), [#allocation3], 1536   ;;  %p3305_p1 = pmov %p3304_p0 }
  0x54   : > { %s2590_s20 = sand.u32 1, %s2419_s10   ;;  %p3306_p11 = scmp.ne.s32.totalorder %s3296_s15, 0 }
  0x55   : > { %2404 = vsyncadd (%p3305_p1), [#allocation3], 4294965760  ;;  %s1950_s26 = sshll.u32 %s2590_s20, 3  ;;  %s151_s19 = scalar_lea.sflag [#allocation6], %s2590_s20 }
  0x56   : > { %s2596_s27 = scalar_lea.vmem [#allocation5], %s1950_s26 }
  0x57   : > { %2406 = dma.done.wait (%p3306_p11), %s151_s19, 128  }
  0x58   : > { %2408 = vsyncadd (%p3306_p11), %s151_s19, 4294967168  ;;  %v3244_v0 = vlaneseq  ;;  %v2433_v1 = vmov 1966171168   ;;  %vm478_vm0 = vcmask 130048   ;;  %v467_v14 = vld [vmem:[#allocation2 + $0x8] sm:$0xff]  ;;  %v466_v15 = vld [vmem:[#allocation2] sm:$0xff] }
  0x59   : > { %v278_v2 = vunpack.c.l.s4 %v2433_v1  ;;  %v1952_v8 = vld [vmem:[%s2596_s27 + $0x1] ss:$4 sm:$0x3]  ;;  %v1953_v9 = vld [vmem:[%s2596_s27 + $0x2] ss:$4 sm:$0x3] }
  0x5a   : > { %v186_v3 = vshrl.u32 %v3244_v0, 7  ;;  %v181_v10 = vmul.f32 7.999992, %v1952_v8  ;;  %v184_v11 = vmul.f32 7.999992, %v1953_v9  ;;  %v480_v17 = vsel %vm478_vm0, %v467_v14, 0 }
  0x5b   : > { %v279_v5 = vunpack.c.0.s8 %v278_v2  ;;  %v2616_v18 = vand.u32 4294901760, %v466_v15  ;;  %v469_v19 = vld [vmem:[#allocation2 + $0x18] sm:$0xff]  ;;  %v468_v20 = vld [vmem:[#allocation2 + $0x10] sm:$0xff]  ;;  %v2622_v25 = vand.u32 4294901760, %v480_v17  ;;  %v471_v61 = vld [vmem:[#allocation2 + $0x28] sm:$0xff]  ;;  %s174_s15 = scalar_lea.vmem [#allocation7], %s1950_s26 }
  0x5c   : > { %v187_v4 = vadd.s32 8, %v186_v3  ;;  %v2603_v6 = vsub.s32 0, %v186_v3  ;;  %v2605_v7 = vsub.s32 1, %v186_v3  ;;  %v2609_v12 = vcvt.s32.f32 %v186_v3  ;;  %s1962_s17 = sshll.u32 %s2471_s13, 7  ;;  %s1859_s22 = sshll.u32 %s174_s15, 4  ;;  %s3194_s22 = int_to_ptr.vmem [resolvable:$true] %s1859_s22 }
  0x5d   : > { %v2613_v16 = vsub.s32 %v279_v5, %v186_v3  ;;  %3312 = vst [vmem:[#allocation16_spill] sm:$0xff] %v2616_v18  ;;  %3313 = vst [vmem:[#allocation17_spill] sm:$0xff] %v2622_v25  ;;  %v2625_v26 = vsub.f32 %v466_v15, %v2616_v18  ;;  %v483_v27 = vsel %vm478_vm0, %v469_v19, 0  ;;  %v2628_v28 = vand.u32 4294901760, %v468_v20  ;;  %s3192_s29 = scalar_lea.hbm %s3240_s2, %s1962_s17  ;;  %s1845_s30 = scalar_lea.sflag [#allocation4], %s2590_s20 }
  0x5e   : > { %3307 = vst [vmem:[#allocation11_spill] sm:$0xff] %v2603_v6  ;;  %3308 = vst [vmem:[#allocation12_spill] sm:$0xff] %v2605_v7  ;;  %v2611_v13 = vcvt.s32.f32 %v187_v4  ;;  %v225_v21 = vrot.slane %v181_v10, %v2605_v7  ;;  %v248_v22 = vrot.slane %v184_v11, %v2603_v6  ;;  %v252_v23 = vrot.slane %v184_v11, %v2605_v7  ;;  %s2357_s13 = scalar_lea.vmem %s3194_s22, 128  ;;  %s2434_s3 = smov [#allocation7]  }
  0x5f   : > { %3309 = vst [vmem:[#allocation13_spill] sm:$0xff] %v2609_v12  ;;  %3311 = vst [vmem:[#allocation15_spill] sm:$0xff] %v2613_v16  ;;  %v221_v24 = vrot.slane %v181_v10, %v2603_v6  ;;  %v2639_v40 = vsub.f32 %v480_v17, %v2622_v25  ;;  %v2642_v44 = vsub.f32 %v468_v20, %v2628_v28  ;;  %v3247_v1 = vand.u32 4294901760, %v2625_v26  ;;  %p2358_p4 = scmp.ne.s32.totalorder %s3194_s22, %s2357_s13  ;;  %s2361_s4 = sshll.u32 %s2434_s3, 4  ;;  %s2362_s4 = int_to_ptr.vmem [resolvable:$false] %s2361_s4 }
  0x60   : > { %3310 = vst [vmem:[#allocation14_spill] sm:$0xff] %v2611_v13  ;;  %3314 = vst [vmem:[#allocation18_spill] sm:$0xff] %v2628_v28  ;;  %v229_v29 = vsub.f32 %v225_v21, %v2609_v12  ;;  %v231_v30 = vsub.f32 %v225_v21, %v2611_v13  ;;  %v255_v31 = vsub.f32 %v248_v22, %v2609_v12  ;;  %v2654_v2 = vand.u32 4294901760, %v483_v27  ;;  %s2363_s5 = scalar_lea.vmem %s2362_s4, 256  ;;  %p2364_p10 = scmp.lt.s32.totalorder %s3194_s22, %s2362_s4 }
  0x61   : > { %v256_v32 = vsub.f32 %v252_v23, %v2609_v12  ;;  %v228_v33 = vsub.f32 %v221_v24, %v2609_v12  ;;  %v230_v34 = vsub.f32 %v221_v24, %v2611_v13  ;;  %v257_v35 = vsub.f32 %v248_v22, %v2611_v13  ;;  %3315 = vst [vmem:[#allocation19_spill] sm:$0xff] %v2639_v40  ;;  %p2359_p6 = pnand %p2358_p4, %p2541_p12  ;;  %p2365_p13 = scmp.lt.s32.totalorder %s2363_s5, %s2357_s13 }
  0x62   : > { %v258_v36 = vsub.f32 %v252_v23, %v2611_v13  ;;  %v233_v37 = vand.u32 2147483647, %v229_v29  ;;  %v235_v38 = vand.u32 2147483647, %v231_v30  ;;  %v259_v39 = vand.u32 2147483647, %v255_v31 }
  0x63   : > { %v260_v41 = vand.u32 2147483647, %v256_v32  ;;  %v232_v42 = vand.u32 2147483647, %v228_v33  ;;  %v234_v43 = vand.u32 2147483647, %v230_v34  ;;  %v2661_v10 = vsub.f32 %v2625_v26, %v3247_v1  ;;  %p2360_p8 = pneg %p2359_p6  ;;  %p2366_p3 = por %p2365_p13, %p2364_p10 }
  0x64   : > { %3316 = vst [vmem:[#allocation20_spill] sm:$0xff] %v2642_v44  ;;  %v237_v45 = vsub.f32 1.0, %v233_v37  ;;  %v239_v46 = vsub.f32 1.0, %v235_v38  ;;  %v263_v47 = vsub.f32 1.0, %v259_v39  ;;  %v261_v48 = vand.u32 2147483647, %v257_v35 }
  0x65   : > { %v264_v49 = vsub.f32 1.0, %v260_v41  ;;  %v236_v50 = vsub.f32 1.0, %v232_v42  ;;  %v238_v51 = vsub.f32 1.0, %v234_v43  ;;  %v262_v52 = vand.u32 2147483647, %v258_v36  ;;  %3317 = vst [vmem:[#allocation21_spill] sm:$0xff] %v2654_v2  ;;  %p2367_p7 = pnand %p2366_p3, %p2360_p8 }
  0x66   : > { %v2644_v53 = vmax.f32 %v237_v45, 0.0  ;;  %v2646_v54 = vmax.f32 %v239_v46, 0.0  ;;  %v267_v55 = vmax.f32 %v263_v47, 0.0  ;;  %v265_v56 = vsub.f32 1.0, %v261_v48 }
  0x67   : > { %v268_v57 = vmax.f32 %v264_v49, 0.0  ;;  %v2648_v58 = vmax.f32 %v236_v50, 0.0  ;;  %v2650_v59 = vmax.f32 %v238_v51, 0.0  ;;  %v266_v60 = vsub.f32 1.0, %v262_v52 }
  0x68   : > { %v269_v62 = vmax.f32 %v265_v56, 0.0  ;;  %v599_v63 = vand.u32 4294901760, %v2639_v40  ;;  %v3245_v8 = vand.u32 4294901760, %v2642_v44  ;;  %v2664_v11 = vsub.f32 %v483_v27, %v2654_v2 }
  0x69   : > { %v275_v3 = vcombine.low %v267_v55, %v268_v57  ;;  %v276_v4 = vcombine.high %v267_v55, %v268_v57  ;;  %v270_v5 = vmax.f32 %v266_v60, 0.0  ;;  %v486_v14 = vsel %vm478_vm0, %v471_v61, 0 }
  0x6a   : > { %v600_v9 = vsub.f32 %v2639_v40, %v599_v63  ;;  %1287 = vmatprep.mubr.f32.mxu0 %v599_v63  ;;  %v2672_v20 = vsub.f32 %v2642_v44, %v3245_v8  ;;  %v3246_v23 = vand.u32 4294901760, %v2664_v11  ;;  %v2676_v24 = vand.u32 4294901760, %v486_v14 }
  0x6b   : > { %v283_v15 = vrot.slane %v275_v3, %v2613_v16  ;;  %v290_v17 = vrot.slane %v276_v4, %v2613_v16  ;;  %v325_v19 = vcombine.low %v269_v62, %v270_v5 }
  0x6c   : > { %v601_v21 = vand.u32 4294901760, %v600_v9  ;;  %3318 = vst [vmem:[#allocation22_spill] sm:$0xff] %v2676_v24  ;;  %v2686_v33 = vsub.f32 %v2664_v11, %v3246_v23  ;;  %v2690_v35 = vsub.f32 %v486_v14, %v2676_v24 }
  0x6d   : > { %v299_v27 = vrot.slane %v283_v15, %v2613_v16  ;;  %v291_v29 = vcombine.high %v283_v15, %v283_v15  ;;  %v306_v30 = vrot.slane %v290_v17, %v2613_v16  ;;  %v292_v31 = vcombine.high %v290_v17, %v290_v17 }
  0x6e   : > { %v2681_v32 = vrot.slane %v325_v19, %v2613_v16  ;;  %602 = vmatprep.mubr.f32.mxu1 %v601_v21  ;;  %3319 = vst [vmem:[#allocation23_spill] sm:$0xff] %v2690_v35 }
  0x6f   : > { %v347_v36 = vrot.slane %v299_v27, %v2605_v7  ;;  %v343_v37 = vrot.slane %v299_v27, %v2603_v6  ;;  %v313_v38 = vrot.slane %v291_v29, %v2613_v16  ;;  %v321_v39 = vcombine.high %v299_v27, %v299_v27 }
  0x70   : > { %v379_v41 = vrot.slane %v306_v30, %v2605_v7  ;;  %v2697_v42 = vrot.slane %v306_v30, %v2603_v6  ;;  %v2700_v43 = vrot.slane %v292_v31, %v2613_v16  ;;  %v2702_v45 = vcombine.high %v306_v30, %v306_v30 }
  0x71   : > { %v431_v46 = vmul.f32 %v347_v36, %v2644_v53  ;;  %v433_v47 = vmul.f32 %v347_v36, %v2646_v54  ;;  %v430_v48 = vmul.f32 %v343_v37, %v2648_v58  ;;  %v432_v49 = vmul.f32 %v343_v37, %v2650_v59 }
  0x72   : > { %v355_v50 = vrot.slane %v313_v38, %v2605_v7  ;;  %v351_v51 = vrot.slane %v313_v38, %v2603_v6  ;;  %v363_v52 = vrot.slane %v321_v39, %v2605_v7  ;;  %v359_v55 = vrot.slane %v321_v39, %v2603_v6 }
  0x73   : > { %v497_v56 = vand.u32 4294901760, %v431_v46  ;;  %v501_v57 = vand.u32 4294901760, %v433_v47  ;;  %v499_v60 = vand.u32 4294901760, %v430_v48  ;;  %v503_v61 = vand.u32 4294901760, %v432_v49 }
  0x74   : > { %v435_v62 = vmul.f32 %v355_v50, %v2644_v53  ;;  %v437_v63 = vmul.f32 %v355_v50, %v2646_v54  ;;  %v434_v3 = vmul.f32 %v351_v51, %v2648_v58  ;;  %v436_v4 = vmul.f32 %v351_v51, %v2650_v59 }
  0x75   : > { %v2716_v5 = vpack.c.bf16 %v501_v57, %v497_v56  ;;  %v2718_v9 = vsub.f32 %v431_v46, %v497_v56  ;;  %v2720_v14 = vsub.f32 %v433_v47, %v501_v57  ;;  %v2722_v15 = vpack.c.bf16 %v503_v61, %v499_v60 }
  0x76   : > { %v2724_v17 = vsub.f32 %v430_v48, %v499_v60  ;;  %v2726_v19 = vsub.f32 %v432_v49, %v503_v61  ;;  %v505_v21 = vand.u32 4294901760, %v435_v62  ;;  %v509_v27 = vand.u32 4294901760, %v437_v63 }
  0x77   : > { %3320 = vst [vmem:[#allocation24_spill] sm:$0xff] %v2716_v5  ;;  %3321 = vst [vmem:[#allocation25_spill] sm:$0xff] %v2718_v9  ;;  %1964 = vmatprep.subr.bf16.mxu1 %v2716_v5  ;;  %2072 = vmatprep.subr.bf16.mxu0 %v2716_v5  ;;  %v507_v29 = vand.u32 4294901760, %v434_v3  ;;  %v511_v30 = vand.u32 4294901760, %v436_v4  ;;  %v439_v31 = vmul.f32 %v363_v52, %v2644_v53 }
  0x78   : > { %3322 = vst [vmem:[#allocation26_spill] sm:$0xff] %v2720_v14  ;;  %3323 = vst [vmem:[#allocation27_spill] sm:$0xff] %v2722_v15  ;;  %v441_v36 = vmul.f32 %v363_v52, %v2646_v54  ;;  %1966 = vmatpush1.bf16.msra.mxu1 %v2722_v15  ;;  %2074 = vmatpush1.bf16.msra.mxu0 %v2722_v15  ;;  %v2734_v37 = vpack.c.bf16 %v509_v27, %v505_v21 }
  0x79   : > { %3324 = vst [vmem:[#allocation28_spill] sm:$0xff] %v2726_v19  ;;  %v2736_v39 = vsub.f32 %v435_v62, %v505_v21  ;;  %v2738_v46 = vsub.f32 %v437_v63, %v509_v27  ;;  %v2741_v48 = vpack.c.bf16 %v511_v30, %v507_v29  ;;  %v2743_v49 = vsub.f32 %v434_v3, %v507_v29 }
  0x7a   : > { %3325 = vst [vmem:[#allocation29_spill] sm:$0xff] %v2734_v37  ;;  %v2745_v50 = vsub.f32 %v436_v4, %v511_v30  ;;  %v513_v51 = vand.u32 4294901760, %v439_v31  ;;  %1968 = vmatprep.subr.bf16.mxu1 %v2734_v37  ;;  %2076 = vmatprep.subr.bf16.mxu0 %v2734_v37  ;;  %v517_v52 = vand.u32 4294901760, %v441_v36  ;;  %v438_v56 = vmul.f32 %v359_v55, %v2648_v58 }
  0x7b   : > { %3326 = vst [vmem:[#allocation30_spill] sm:$0xff] %v2741_v48  ;;  %v440_v57 = vmul.f32 %v359_v55, %v2650_v59  ;;  %v323_v60 = vcombine.high %v313_v38, %v313_v38  ;;  %v447_v62 = vmul.f32 %v379_v41, %v2644_v53  ;;  %v449_v63 = vmul.f32 %v379_v41, %v2646_v54 }
  0x7c   : > { %v2751_v61 = vsub.f32 %v439_v31, %v513_v51  ;;  %v446_v3 = vmul.f32 %v2697_v42, %v2648_v58  ;;  %1970 = vmatpush1.bf16.msra.mxu1 %v2741_v48  ;;  %2078 = vmatpush1.bf16.msra.mxu0 %v2741_v48  ;;  %v2759_v4 = vpack.c.bf16 %v517_v52, %v513_v51  ;;  %v515_v27 = vand.u32 4294901760, %v438_v56 }
  0x7d   : > { %v2761_v21 = vsub.f32 %v441_v36, %v517_v52  ;;  %v519_v55 = vand.u32 4294901760, %v440_v57  ;;  %v371_v38 = vrot.slane %v323_v60, %v2605_v7  ;;  %v367_v29 = vrot.slane %v323_v60, %v2603_v6 }
  0x7e   : > { %3327 = vst [vmem:[#allocation31_spill] sm:$0xff] %v2759_v4  ;;  %v529_v30 = vand.u32 4294901760, %v447_v62  ;;  %v533_v31 = vand.u32 4294901760, %v449_v63  ;;  %1972 = vmatprep.subr.bf16.mxu1 %v2759_v4  ;;  %2080 = vmatprep.subr.bf16.mxu0 %v2759_v4  ;;  %v2769_v0 = vsub.f32 %v438_v56, %v515_v27  ;;  %v531_v36 = vand.u32 4294901760, %v446_v3 }
  0x7f   : > { %v2767_v41 = vpack.c.bf16 %v519_v55, %v515_v27  ;;  %v2771_v51 = vsub.f32 %v440_v57, %v519_v55  ;;  %v443_v52 = vmul.f32 %v371_v38, %v2644_v53  ;;  %v445_v34 = vmul.f32 %v371_v38, %v2646_v54 }
  0x80   : > { %v442_v8 = vmul.f32 %v367_v29, %v2648_v58  ;;  %v444_v60 = vmul.f32 %v367_v29, %v2650_v59  ;;  %v2779_v23 = vpack.c.bf16 %v533_v31, %v529_v30  ;;  %v2781_v1 = vsub.f32 %v447_v62, %v529_v30 }
  0x81   : > { %3328 = vst [vmem:[#allocation32_spill] sm:$0xff] %v2767_v41  ;;  %1974 = vmatpush1.bf16.msra.mxu1 %v2767_v41  ;;  %2082 = vmatpush1.bf16.msra.mxu0 %v2767_v41  ;;  %v2783_v56 = vsub.f32 %v449_v63, %v533_v31  ;;  %v521_v27 = vand.u32 4294901760, %v443_v52  ;;  %v525_v55 = vand.u32 4294901760, %v445_v34  ;;  %v448_v47 = vmul.f32 %v2697_v42, %v2650_v59 }
  0x82   : > { %3329 = vst [vmem:[#allocation33_spill] sm:$0xff] %v2779_v23  ;;  %v523_v22 = vand.u32 4294901760, %v442_v8  ;;  %v527_v38 = vand.u32 4294901760, %v444_v60  ;;  %v2788_v29 = vsub.f32 %v446_v3, %v531_v36  ;;  %v387_v13 = vrot.slane %v2700_v43, %v2605_v7 }
  0x83   : > { %v383_v62 = vrot.slane %v2700_v43, %v2603_v6  ;;  %v2794_v30 = vpack.c.bf16 %v525_v55, %v521_v27  ;;  %v2796_v63 = vsub.f32 %v443_v52, %v521_v27  ;;  %v2798_v31 = vsub.f32 %v445_v34, %v525_v55 }
  0x84   : > { %v2800_v57 = vpack.c.bf16 %v527_v38, %v523_v22  ;;  %v2802_v12 = vsub.f32 %v442_v8, %v523_v22  ;;  %v2804_v40 = vsub.f32 %v444_v60, %v527_v38  ;;  %v535_v42 = vand.u32 4294901760, %v448_v47 }
  0x85   : > { %3330 = vst [vmem:[#allocation34_spill] sm:$0xff] %v2794_v30  ;;  %v451_v3 = vmul.f32 %v387_v13, %v2644_v53  ;;  %1976 = vmatprep.subr.bf16.mxu1 %v2794_v30  ;;  %2084 = vmatprep.subr.bf16.mxu0 %v2794_v30  ;;  %v453_v41 = vmul.f32 %v387_v13, %v2646_v54 }
  0x86   : > { %3331 = vst [vmem:[#allocation35_spill] sm:$0xff] %v2800_v57  ;;  %v450_v52 = vmul.f32 %v383_v62, %v2648_v58  ;;  %v452_v34 = vmul.f32 %v383_v62, %v2650_v59  ;;  %1978 = vmatpush1.bf16.msra.mxu1 %v2800_v57  ;;  %2086 = vmatpush1.bf16.msra.mxu0 %v2800_v57 }
  0x87   : > { %v2815_v8 = vpack.c.bf16 %v535_v42, %v531_v36  ;;  %v2817_v22 = vsub.f32 %v448_v47, %v535_v42  ;;  %v537_v60 = vand.u32 4294901760, %v451_v3  ;;  %v395_v55 = vrot.slane %v2702_v45, %v2605_v7  ;;  %1980 = vmatprep.subr.bf16.mxu1 %v2779_v23  ;;  %2088 = vmatprep.subr.bf16.mxu0 %v2779_v23 }
  0x88   : > { %v541_v13 = vand.u32 4294901760, %v453_v41  ;;  %v539_v38 = vand.u32 4294901760, %v450_v52  ;;  %v543_v62 = vand.u32 4294901760, %v452_v34  ;;  %v391_v27 = vrot.slane %v2702_v45, %v2603_v6 }
  0x89   : > { %3332 = vst [vmem:[#allocation36_spill] sm:$0xff] %v2815_v8  ;;  %v2825_v30 = vsub.f32 %v451_v3, %v537_v60  ;;  %v455_v36 = vmul.f32 %v395_v55, %v2644_v53  ;;  %v457_v47 = vmul.f32 %v395_v55, %v2646_v54  ;;  %v324_v42 = vcombine.high %v2700_v43, %v2700_v43 }
  0x8a   : > { %v2831_v57 = vpack.c.bf16 %v541_v13, %v537_v60  ;;  %v2833_v24 = vsub.f32 %v453_v41, %v541_v13  ;;  %v2835_v23 = vpack.c.bf16 %v543_v62, %v539_v38  ;;  %v2837_v28 = vsub.f32 %v450_v52, %v539_v38  ;;  %1982 = vmatpush1.bf16.msra.mxu1 %v2815_v8 }
  0x8b   : > { %2090 = vmatpush1.bf16.msra.mxu0 %v2815_v8  ;;  %v2841_v45 = vsub.f32 %v452_v34, %v543_v62  ;;  %v545_v3 = vand.u32 4294901760, %v455_v36  ;;  %v549_v4 = vand.u32 4294901760, %v457_v47  ;;  %v454_v55 = vmul.f32 %v391_v27, %v2648_v58 }
  0x8c   : > { %3333 = vst [vmem:[#allocation37_spill] sm:$0xff] %v2831_v57  ;;  %3334 = vst [vmem:[#allocation38_spill] sm:$0xff] %v2835_v23  ;;  %1984 = vmatprep.subr.bf16.mxu1 %v2831_v57  ;;  %2092 = vmatprep.subr.bf16.mxu0 %v2831_v57  ;;  %v456_v43 = vmul.f32 %v391_v27, %v2650_v59  ;;  %v403_v41 = vrot.slane %v324_v42, %v2605_v7  ;;  %v714_v60 = vand.u32 4294901760, %v2726_v19 }
  0x8d   : > { %v399_v52 = vrot.slane %v324_v42, %v2603_v6  ;;  %v2850_v13 = vpack.c.bf16 %v549_v4, %v545_v3  ;;  %v2852_v34 = vsub.f32 %v455_v36, %v545_v3  ;;  %v2854_v38 = vsub.f32 %v457_v47, %v549_v4 }
  0x8e   : > { %v547_v62 = vand.u32 4294901760, %v454_v55  ;;  %v551_v8 = vand.u32 4294901760, %v456_v43  ;;  %v459_v48 = vmul.f32 %v403_v41, %v2644_v53  ;;  %v461_v57 = vmul.f32 %v403_v41, %v2646_v54  ;;  %1986 = vmatpush1.bf16.msra.mxu1 %v2835_v23 }
  0x8f   : > { %3335 = vst [vmem:[#allocation39_spill] sm:$0xff] %v2850_v13  ;;  %v458_v27 = vmul.f32 %v399_v52, %v2648_v58  ;;  %2094 = vmatpush1.bf16.msra.mxu0 %v2835_v23  ;;  %v460_v37 = vmul.f32 %v399_v52, %v2650_v59  ;;  %v339_v4 = vrot.slane %v2681_v32, %v2613_v16  ;;  %v720_v36 = vand.u32 4294901760, %v2736_v39 }
  0x90   : > { %v2861_v42 = vsub.f32 %v454_v55, %v547_v62  ;;  %1988 = vmatprep.subr.bf16.mxu1 %v2850_v13  ;;  %2096 = vmatprep.subr.bf16.mxu0 %v2850_v13  ;;  %v2869_v47 = vpack.c.bf16 %v551_v8, %v547_v62  ;;  %v2871_v3 = vsub.f32 %v456_v43, %v551_v8  ;;  %v553_v41 = vand.u32 4294901760, %v459_v48 }
  0x91   : > { %v557_v2 = vand.u32 4294901760, %v461_v57  ;;  %v555_v23 = vand.u32 4294901760, %v458_v27  ;;  %v559_v55 = vand.u32 4294901760, %v460_v37  ;;  %v411_v15 = vrot.slane %v339_v4, %v2605_v7 }
  0x92   : > { %3336 = vst [vmem:[#allocation40_spill] sm:$0xff] %v2869_v47  ;;  %v407_v52 = vrot.slane %v339_v4, %v2603_v6  ;;  %v2877_v32 = vsub.f32 %v459_v48, %v553_v41  ;;  %v3338_v13 = vand.u32 4294901760, %v2718_v9  ;;  %1990 = vmatpush1.bf16.msra.mxu1 %v2869_v47  ;;  %v732_v4 = vand.u32 4294901760, %v2738_v46 }
  0x93   : > { %v2875_v18 = vpack.c.bf16 %v557_v2, %v553_v41  ;;  %v2879_v16 = vsub.f32 %v461_v57, %v557_v2  ;;  %2098 = vmatpush1.bf16.msra.mxu0 %v2869_v47  ;;  %v2886_v8 = vpack.c.bf16 %v559_v55, %v555_v23  ;;  %v2888_v43 = vsub.f32 %v458_v27, %v555_v23 }
  0x94   : > { %v697_v62 = vsub.f32 %v2718_v9, %v3338_v13  ;;  %v2890_v7 = vsub.f32 %v460_v37, %v559_v55  ;;  %v463_v2 = vmul.f32 %v411_v15, %v2644_v53  ;;  %v465_v48 = vmul.f32 %v411_v15, %v2646_v54 }
  0x95   : > { %3337 = vst [vmem:[#allocation41_spill] sm:$0xff] %v2875_v18  ;;  %3339 = vst [vmem:[#allocation42_spill] sm:$0xff] %v2886_v8  ;;  %1992 = vmatprep.subr.bf16.mxu1 %v2875_v18  ;;  %2100 = vmatprep.subr.bf16.mxu0 %v2875_v18  ;;  %v462_v57 = vmul.f32 %v407_v52, %v2648_v58  ;;  %v464_v41 = vmul.f32 %v407_v52, %v2650_v59  ;;  %v3340_v23 = vand.u32 4294901760, %v2720_v14 }
  0x96   : > { %v698_v13 = vand.u32 4294901760, %v697_v62  ;;  %v3341_v27 = vand.u32 4294901760, %v2718_v9  ;;  %v3343_v18 = vand.u32 4294901760, %v2724_v17  ;;  %v561_v47 = vand.u32 4294901760, %v463_v2  ;;  %1994 = vmatpush1.bf16.msra.mxu1 %v2886_v8 }
  0x97   : > { %v709_v37 = vsub.f32 %v2720_v14, %v3340_v23  ;;  %v3342_v55 = vmov %v3340_v23  ;;  %v565_v54 = vand.u32 4294901760, %v465_v48  ;;  %v563_v15 = vand.u32 4294901760, %v462_v57  ;;  %2102 = vmatpush1.bf16.msra.mxu0 %v2886_v8 }
  0x98   : > { %v2107_v6 = vpack.c.bf16 %v3342_v55, %v3341_v27  ;;  %v703_v53 = vsub.f32 %v2724_v17, %v3343_v18  ;;  %v715_v58 = vsub.f32 %v2726_v19, %v714_v60  ;;  %v567_v59 = vand.u32 4294901760, %v464_v41 }
  0x99   : > { %v710_v52 = vand.u32 4294901760, %v709_v37  ;;  %v3344_v23 = vmov %v3343_v18  ;;  %v2914_v27 = vpack.c.bf16 %v565_v54, %v561_v47  ;;  %v2916_v55 = vsub.f32 %v463_v2, %v561_v47 }
  0x9a   : > { %v704_v62 = vand.u32 4294901760, %v703_v53  ;;  %v2109_v5 = vpack.c.bf16 %v714_v60, %v3344_v23  ;;  %v2918_v18 = vsub.f32 %v465_v48, %v565_v54  ;;  %v2920_v25 = vsub.f32 %v462_v57, %v563_v15 }
  0x9b   : > { %3345 = vst [vmem:[#allocation43_spill] sm:$0xff] %v2914_v27  ;;  %v2922_v14 = vpack.c.bf16 %v567_v59, %v563_v15  ;;  %v2924_v19 = vsub.f32 %v464_v41, %v567_v59  ;;  %v1999_v9 = vpack.c.bf16 %v710_v52, %v698_v13  ;;  %v716_v8 = vand.u32 4294901760, %v715_v58  ;;  %1996 = vmatprep.subr.bf16.mxu1 %v2914_v27 }
  0x9c   : > { %2104 = vmatprep.subr.bf16.mxu0 %v2914_v27  ;;  %v721_v60 = vsub.f32 %v2736_v39, %v720_v36  ;;  %v733_v37 = vsub.f32 %v2738_v46, %v732_v4  ;;  %v2111_v47 = vpack.c.bf16 %v732_v4, %v720_v36  ;;  %v726_v2 = vand.u32 4294901760, %v2743_v49 }
  0x9d   : > { %3346 = vst [vmem:[#allocation44_spill] sm:$0xff] %v2922_v14  ;;  %1998 = vmatpush1.bf16.msra.mxu1 %v2922_v14  ;;  %2106 = vmatpush1.bf16.msra.mxu0 %v2922_v14  ;;  %v2001_v48 = vpack.c.bf16 %v716_v8, %v704_v62  ;;  %v738_v57 = vand.u32 4294901760, %v2745_v50  ;;  %v744_v13 = vand.u32 4294901760, %v2751_v61  ;;  %v756_v41 = vand.u32 4294901760, %v2761_v21 }
  0x9e   : > { %2000 = vmatprep.subr.bf16.mxu1 %v1999_v9  ;;  %2108 = vmatprep.subr.bf16.mxu0 %v2107_v6  ;;  %v722_v53 = vand.u32 4294901760, %v721_v60  ;;  %v734_v54 = vand.u32 4294901760, %v733_v37  ;;  %v727_v15 = vsub.f32 %v2743_v49, %v726_v2  ;;  %v750_v36 = vand.u32 4294901760, %v2769_v0 }
  0x9f   : > { %v739_v4 = vsub.f32 %v2745_v50, %v738_v57  ;;  %v2113_v58 = vpack.c.bf16 %v738_v57, %v726_v2  ;;  %v745_v59 = vsub.f32 %v2751_v61, %v744_v13  ;;  %v757_v8 = vsub.f32 %v2761_v21, %v756_v41 }
  0xa0   : > { %v3347_v52 = vand.u32 4294901760, %v2661_v10  ;;  %v3348_v62 = vand.u32 4294901760, %v2625_v26  ;;  %v2003_v6 = vpack.c.bf16 %v734_v54, %v722_v53  ;;  %v728_v9 = vand.u32 4294901760, %v727_v15 }
  0xa1   : > { %v2115_v23 = vpack.c.bf16 %v756_v41, %v744_v13  ;;  %v751_v60 = vsub.f32 %v2769_v0, %v750_v36  ;;  %v740_v37 = vand.u32 4294901760, %v739_v4  ;;  %v746_v14 = vand.u32 4294901760, %v745_v59 }
  0xa2   : > { %608 = vmatmul.mubr.f32.vlgmr.msra.gmra.mrb[0].mxu1 %v3347_v52  ;;  %1291 = vmatmul.mubr.f32.vlgmr.msra.gmra.mrb[0].mxu0 %v3348_v62  ;;  %v758_v2 = vand.u32 4294901760, %v757_v8  ;;  %v762_v57 = vand.u32 4294901760, %v2771_v51  ;;  %v768_v10 = vand.u32 4294901760, %v2796_v63  ;;  %v780_v52 = vand.u32 4294901760, %v2798_v31 }
  0xa3   : > { %2002 = vmatpush1.bf16.msra.mxu1 %v2001_v48  ;;  %2110 = vmatpush1.bf16.msra.mxu0 %v2109_v5  ;;  %v752_v27 = vand.u32 4294901760, %v751_v60  ;;  %v774_v53 = vand.u32 4294901760, %v2802_v12  ;;  %v2005_v54 = vpack.c.bf16 %v740_v37, %v728_v9  ;;  %v3349_v5 = vand.u32 4294901760, %v2664_v11 }
  0xa4   : > { %2004 = vmatprep.subr.bf16.mxu1 %v2003_v6  ;;  %2112 = vmatprep.subr.bf16.mxu0 %v2111_v47  ;;  %v2007_v13 = vpack.c.bf16 %v758_v2, %v746_v14  ;;  %v763_v41 = vsub.f32 %v2771_v51, %v762_v57  ;;  %v2117_v48 = vpack.c.bf16 %v762_v57, %v750_v36  ;;  %v3350_v8 = vand.u32 4294901760, %v2642_v44 }
  0xa5   : > { %1299 = vmatprep.mubr.f32.mxu0 %v3349_v5  ;;  %v769_v15 = vsub.f32 %v2796_v63, %v768_v10  ;;  %v781_v4 = vsub.f32 %v2798_v31, %v780_v52  ;;  %v2119_v47 = vpack.c.bf16 %v780_v52, %v768_v10  ;;  %v775_v59 = vsub.f32 %v2802_v12, %v774_v53 }
  0xa6   : > { %1303 = vmatmul.mubr.f32.gmra.mrb[2].mxu0 %v3350_v8  ;;  %v764_v62 = vand.u32 4294901760, %v763_v41  ;;  %v786_v14 = vand.u32 4294901760, %v2804_v40  ;;  %v617_v36 = vand.u32 4294901760, %v2686_v33  ;;  %v792_v6 = vand.u32 4294901760, %v2781_v1 }
  0xa7   : > { %2006 = vmatpush1.bf16.msra.mxu1 %v2005_v54  ;;  %2114 = vmatpush1.bf16.msra.mxu0 %v2113_v58  ;;  %v770_v9 = vand.u32 4294901760, %v769_v15  ;;  %v782_v60 = vand.u32 4294901760, %v781_v4  ;;  %v776_v37 = vand.u32 4294901760, %v775_v59  ;;  %v804_v2 = vand.u32 4294901760, %v2783_v56 }
  0xa8   : > { %2008 = vmatprep.subr.bf16.mxu1 %v2007_v13  ;;  %2116 = vmatprep.subr.bf16.mxu0 %v2115_v23  ;;  %v2009_v57 = vpack.c.bf16 %v764_v62, %v752_v27  ;;  %v787_v10 = vsub.f32 %v2804_v40, %v786_v14  ;;  %v2121_v52 = vpack.c.bf16 %v786_v14, %v774_v53  ;;  %v3351_v5 = vand.u32 4294901760, %v2672_v20  ;;  %v470_v62 = vld [vmem:[#allocation2 + $0x20] sm:$0xff] }
  0xa9   : > { %618 = vmatprep.mubr.f32.mxu1 %v617_v36  ;;  %v793_v58 = vsub.f32 %v2781_v1, %v792_v6  ;;  %v2011_v54 = vpack.c.bf16 %v782_v60, %v770_v9  ;;  %v805_v41 = vsub.f32 %v2783_v56, %v804_v2  ;;  %v2123_v33 = vpack.c.bf16 %v804_v2, %v792_v6 }
  0xaa   : > { %624 = vmatmul.mubr.f32.gmra.mrb[2].mxu1 %v3351_v5  ;;  %v798_v23 = vand.u32 4294901760, %v2788_v29  ;;  %v788_v13 = vand.u32 4294901760, %v787_v10  ;;  %v810_v27 = vand.u32 4294901760, %v2817_v22  ;;  %v631_v53 = vand.u32 4294901760, %v2690_v35 }
  0xab   : > { %2010 = vmatpush1.bf16.msra.mxu1 %v2009_v57  ;;  %2118 = vmatpush1.bf16.msra.mxu0 %v2117_v48  ;;  %v794_v15 = vand.u32 4294901760, %v793_v58  ;;  %v806_v4 = vand.u32 4294901760, %v805_v41  ;;  %v816_v8 = vand.u32 4294901760, %v2825_v30  ;;  %v828_v20 = vand.u32 4294901760, %v2833_v24  ;;  %v473_v57 = vld [vmem:[#allocation2 + $0x38] sm:$0xff] }
  0xac   : > { %2012 = vmatprep.subr.bf16.mxu1 %v2011_v54  ;;  %2120 = vmatprep.subr.bf16.mxu0 %v2119_v47  ;;  %v799_v59 = vsub.f32 %v2788_v29, %v798_v23  ;;  %v2013_v14 = vpack.c.bf16 %v788_v13, %v776_v37  ;;  %v811_v36 = vsub.f32 %v2817_v22, %v810_v27  ;;  %v2977_v41 = vand.u32 4294901760, %v470_v62 }
  0xad   : > { %v2125_v48 = vpack.c.bf16 %v810_v27, %v798_v23  ;;  %v632_v6 = vsub.f32 %v2690_v35, %v631_v53  ;;  %1311 = vmatprep.mubr.f32.mxu0 %v631_v53  ;;  %v2015_v9 = vpack.c.bf16 %v806_v4, %v794_v15  ;;  %v817_v2 = vsub.f32 %v2825_v30, %v816_v8  ;;  %v472_v4 = vld [vmem:[#allocation2 + $0x30] sm:$0xff] }
  0xae   : > { %v800_v60 = vand.u32 4294901760, %v799_v59  ;;  %v829_v47 = vsub.f32 %v2833_v24, %v828_v20  ;;  %v812_v10 = vand.u32 4294901760, %v811_v36  ;;  %v2127_v54 = vpack.c.bf16 %v828_v20, %v816_v8 }
  0xaf   : > { %2014 = vmatpush1.bf16.msra.mxu1 %v2013_v14  ;;  %2122 = vmatpush1.bf16.msra.mxu0 %v2121_v52  ;;  %v633_v58 = vand.u32 4294901760, %v632_v6  ;;  %v818_v37 = vand.u32 4294901760, %v817_v2  ;;  %v822_v23 = vand.u32 4294901760, %v2837_v28  ;;  %v834_v13 = vand.u32 4294901760, %v2841_v45 }
  0xb0   : > { %2016 = vmatprep.subr.bf16.mxu1 %v2015_v9  ;;  %2124 = vmatprep.subr.bf16.mxu0 %v2123_v33  ;;  %v830_v5 = vand.u32 4294901760, %v829_v47  ;;  %v2017_v15 = vpack.c.bf16 %v812_v10, %v800_v60  ;;  %v2982_v27 = vsub.f32 %v470_v62, %v2977_v41  ;;  %v489_v52 = vsel %vm478_vm0, %v473_v57, 0 }
  0xb1   : > { %634 = vmatprep.mubr.f32.mxu1 %v633_v58  ;;  %v840_v53 = vand.u32 4294901760, %v2852_v34  ;;  %v823_v8 = vsub.f32 %v2837_v28, %v822_v23  ;;  %v835_v33 = vsub.f32 %v2841_v45, %v834_v13  ;;  %v2129_v20 = vpack.c.bf16 %v834_v13, %v822_v23 }
  0xb2   : > { %3352 = vst [vmem:[#allocation45_spill] sm:$0xff] %v2982_v27  ;;  %v2019_v59 = vpack.c.bf16 %v830_v5, %v818_v37  ;;  %v637_v14 = vand.u32 4294901760, %v2982_v27  ;;  %v2989_v36 = vand.u32 4294901760, %v489_v52  ;;  %v852_v6 = vand.u32 4294901760, %v2854_v38  ;;  %v475_v37 = vld [vmem:[#allocation2 + $0x48] sm:$0xff] }
  0xb3   : > { %2018 = vmatpush1.bf16.msra.mxu1 %v2017_v15  ;;  %2126 = vmatpush1.bf16.msra.mxu0 %v2125_v48  ;;  %v841_v62 = vsub.f32 %v2852_v34, %v840_v53  ;;  %v824_v9 = vand.u32 4294901760, %v823_v8  ;;  %v836_v60 = vand.u32 4294901760, %v835_v33  ;;  %v2993_v2 = vand.u32 4294901760, %v472_v4 }
  0xb4   : > { %2020 = vmatprep.subr.bf16.mxu1 %v2019_v59  ;;  %2128 = vmatprep.subr.bf16.mxu0 %v2127_v54  ;;  %v846_v47 = vand.u32 4294901760, %v2861_v42  ;;  %v638_v57 = vsub.f32 %v2982_v27, %v637_v14  ;;  %v2998_v48 = vsub.f32 %v489_v52, %v2989_v36  ;;  %v853_v58 = vsub.f32 %v2854_v38, %v852_v6 }
  0xb5   : > { %1315 = vmatmul.mubr.f32.gmra.mrb[4].mxu0 %v637_v14  ;;  %v842_v10 = vand.u32 4294901760, %v841_v62  ;;  %v2021_v5 = vpack.c.bf16 %v836_v60, %v824_v9  ;;  %v2131_v23 = vpack.c.bf16 %v852_v6, %v840_v53  ;;  %v3002_v54 = vsub.f32 %v472_v4, %v2993_v2  ;;  %v474_v4 = vld [vmem:[#allocation2 + $0x40] sm:$0xff] }
  0xb6   : > { %3353 = vst [vmem:[#allocation46_spill] sm:$0xff] %v2998_v48  ;;  %v847_v13 = vsub.f32 %v2861_v42, %v846_v47  ;;  %v639_v15 = vand.u32 4294901760, %v638_v57  ;;  %v647_v59 = vand.u32 4294901760, %v2998_v48  ;;  %v854_v8 = vand.u32 4294901760, %v853_v58 }
  0xb7   : > { %3354 = vst [vmem:[#allocation47_spill] sm:$0xff] %v3002_v54  ;;  %2130 = vmatpush1.bf16.msra.mxu0 %v2129_v20  ;;  %v858_v33 = vand.u32 4294901760, %v2871_v3  ;;  %2022 = vmatpush1.bf16.msra.mxu1 %v2021_v5  ;;  %v653_v52 = vand.u32 4294901760, %v3002_v54  ;;  %v492_v62 = vsel %vm478_vm0, %v475_v37, 0  ;;  %v864_v53 = vand.u32 4294901760, %v2877_v32 }
  0xb8   : > { %2132 = vmatprep.subr.bf16.mxu0 %v2131_v23  ;;  %v848_v14 = vand.u32 4294901760, %v847_v13  ;;  %640 = vmatmul.mubr.f32.gmra.mrb[4].mxu1 %v639_v15  ;;  %v648_v6 = vsub.f32 %v2998_v48, %v647_v59  ;;  %v2023_v9 = vpack.c.bf16 %v854_v8, %v842_v10  ;;  %v3012_v60 = vand.u32 4294901760, %v492_v62 }
  0xb9   : > { %1323 = vmatprep.mubr.f32.mxu0 %v647_v59  ;;  %v859_v20 = vsub.f32 %v2871_v3, %v858_v33  ;;  %v654_v57 = vsub.f32 %v3002_v54, %v653_v52  ;;  %v2133_v58 = vpack.c.bf16 %v858_v33, %v846_v47  ;;  %v865_v5 = vsub.f32 %v2877_v32, %v864_v53  ;;  %v477_v59 = vld [vmem:[#allocation2 + $0x58] sm:$0xff] }
  0xba   : > { %1327 = vmatmul.mubr.f32.gmra.mrb[6].mxu0 %v653_v52  ;;  %v876_v37 = vand.u32 4294901760, %v2879_v16  ;;  %v649_v23 = vand.u32 4294901760, %v648_v6  ;;  %2024 = vmatprep.subr.bf16.mxu1 %v2023_v9  ;;  %v3018_v15 = vsub.f32 %v492_v62, %v3012_v60  ;;  %v3020_v10 = vand.u32 4294901760, %v474_v4 }
  0xbb   : > { %v860_v13 = vand.u32 4294901760, %v859_v20  ;;  %v655_v8 = vand.u32 4294901760, %v654_v57  ;;  %2134 = vmatpush1.bf16.msra.mxu0 %v2133_v58  ;;  %v866_v48 = vand.u32 4294901760, %v865_v5  ;;  %v870_v9 = vand.u32 4294901760, %v2888_v43 }
  0xbc   : > { %3355 = vst [vmem:[#allocation48_spill] sm:$0xff] %v3018_v15  ;;  %v877_v54 = vsub.f32 %v2879_v16, %v876_v37  ;;  %v2135_v52 = vpack.c.bf16 %v876_v37, %v864_v53  ;;  %650 = vmatprep.mubr.f32.mxu1 %v649_v23  ;;  %v663_v33 = vand.u32 4294901760, %v3018_v15  ;;  %v3025_v6 = vsub.f32 %v474_v4, %v3020_v10  ;;  %v476_v37 = vld [vmem:[#allocation2 + $0x50] sm:$0xff] }
  0xbd   : > { %v2025_v47 = vpack.c.bf16 %v860_v13, %v848_v14  ;;  %656 = vmatmul.mubr.f32.gmra.mrb[6].mxu1 %v655_v8  ;;  %v882_v20 = vand.u32 4294901760, %v2890_v7  ;;  %v495_v57 = vsel %vm478_vm0, %v477_v59, 0  ;;  %v888_v58 = vand.u32 4294901760, %v2916_v55 }
  0xbe   : > { %3356 = vst [vmem:[#allocation49_spill] sm:$0xff] %v3025_v6  ;;  %v878_v62 = vand.u32 4294901760, %v877_v54  ;;  %2136 = vmatprep.subr.bf16.mxu0 %v2135_v52  ;;  %v664_v53 = vsub.f32 %v3018_v15, %v663_v33  ;;  %1335 = vmatprep.mubr.f32.mxu0 %v663_v33  ;;  %v669_v14 = vand.u32 4294901760, %v3025_v6  ;;  %v871_v4 = vsub.f32 %v2888_v43, %v870_v9 }
  0xbf   : > { %2026 = vmatpush1.bf16.msra.mxu1 %v2025_v47  ;;  %v3034_v5 = vand.u32 4294901760, %v495_v57  ;;  %v883_v54 = vsub.f32 %v2890_v7, %v882_v20  ;;  %v2137_v13 = vpack.c.bf16 %v882_v20, %v870_v9  ;;  %v889_v8 = vsub.f32 %v2916_v55, %v888_v58 }
  0xc0   : > { %v2027_v23 = vpack.c.bf16 %v878_v62, %v866_v48  ;;  %v665_v59 = vand.u32 4294901760, %v664_v53  ;;  %v670_v52 = vsub.f32 %v3025_v6, %v669_v14  ;;  %v872_v47 = vand.u32 4294901760, %v871_v4  ;;  %1339 = vmatmul.mubr.f32.gmra.mrb[8].mxu0 %v669_v14 }
  0xc1   : > { %v3040_v33 = vsub.f32 %v495_v57, %v3034_v5  ;;  %v884_v15 = vand.u32 4294901760, %v883_v54  ;;  %2138 = vmatpush1.bf16.msra.mxu0 %v2137_v13  ;;  %v890_v27 = vand.u32 4294901760, %v889_v8  ;;  %v900_v35 = vand.u32 4294901760, %v2918_v18 }
  0xc2   : > { %2028 = vmatprep.subr.bf16.mxu1 %v2027_v23  ;;  %v3043_v48 = vand.u32 4294901760, %v476_v37  ;;  %666 = vmatprep.mubr.f32.mxu1 %v665_v59  ;;  %v671_v9 = vand.u32 4294901760, %v670_v52  ;;  %v894_v20 = vand.u32 4294901760, %v2920_v25  ;;  %v906_v53 = vand.u32 4294901760, %v2924_v19 }
  0xc3   : > { %3357 = vst [vmem:[#allocation50_spill] sm:$0xff] %v3040_v33  ;;  %v679_v62 = vand.u32 4294901760, %v3040_v33  ;;  %v2029_v14 = vpack.c.bf16 %v884_v15, %v872_v47  ;;  %v901_v57 = vsub.f32 %v2918_v18, %v900_v35  ;;  %v2139_v4 = vpack.c.bf16 %v900_v35, %v888_v58 }
  0xc4   : > { %v3050_v23 = vsub.f32 %v476_v37, %v3043_v48  ;;  %672 = vmatmul.mubr.f32.gmra.mrb[8].mxu1 %v671_v9  ;;  %v895_v13 = vsub.f32 %v2920_v25, %v894_v20  ;;  %v907_v8 = vsub.f32 %v2924_v19, %v906_v53  ;;  %v2141_v15 = vpack.c.bf16 %v906_v53, %v894_v20  ;;  %v3358_v9 = vld [vmem:[#allocation25_spill] sm:$0xff]  ;;  %v3363_v53 = vld [vmem:[#allocation16_spill] sm:$0xff] }
  0xc5   : > { %v680_v54 = vsub.f32 %v3040_v33, %v679_v62  ;;  %1347 = vmatprep.mubr.f32.mxu0 %v679_v62  ;;  %2030 = vmatpush1.bf16.msra.mxu1 %v2029_v14  ;;  %v902_v59 = vand.u32 4294901760, %v901_v57  ;;  %v3359_v33 = vld [vmem:[#allocation26_spill] sm:$0xff]  ;;  %v3360_v57 = vld [vmem:[#allocation17_spill] sm:$0xff] }
  0xc6   : > { %2140 = vmatprep.subr.bf16.mxu0 %v2139_v4  ;;  %v685_v52 = vand.u32 4294901760, %v3050_v23  ;;  %v896_v6 = vand.u32 4294901760, %v895_v13  ;;  %v908_v35 = vand.u32 4294901760, %v907_v8  ;;  %v2035_v62 = vpack.c.bf16 %v3359_v33, %v3358_v9  ;;  %v3361_v4 = vld [vmem:[#allocation24_spill] sm:$0xff]  ;;  %v3364_v33 = vld [vmem:[#allocation27_spill] sm:$0xff]  ;;  %v3366_v13 = vld [vmem:[#allocation29_spill] sm:$0xff] }
  0xc7   : > { %v681_v47 = vand.u32 4294901760, %v680_v54  ;;  %v2031_v58 = vpack.c.bf16 %v902_v59, %v890_v27  ;;  %2142 = vmatpush1.bf16.msra.mxu0 %v2141_v15  ;;  %v3362_v27 = vld [vmem:[#allocation28_spill] sm:$0xff]  ;;  %v3365_v54 = vld [vmem:[#allocation21_spill] sm:$0xff]  ;;  %v2043_v8 = vpack.c.bf16 %v2761_v21, %v2751_v61  ;;  %v3368_v59 = vld [vmem:[#allocation31_spill] sm:$0xff]  ;;  %v2047_v61 = vpack.c.bf16 %v2798_v31, %v2796_v63 }
  0xc8   : > { %v686_v37 = vsub.f32 %v3050_v23, %v685_v52  ;;  %1351 = vmatmul.mubr.f32.gmra.mrb[10].mxu0 %v685_v52  ;;  %v2033_v44 = vpack.c.bf16 %v908_v35, %v896_v6  ;;  %2144 = vmatprep.subr.bf16.mxu0 %v3361_v4  ;;  %v2037_v20 = vpack.c.bf16 %v3362_v27, %v2724_v17  ;;  %v3367_v17 = vld [vmem:[#allocation30_spill] sm:$0xff]  ;;  %v3374_v31 = vld [vmem:[#allocation33_spill] sm:$0xff]  ;;  %v3380_v52 = vld [vmem:[#allocation40_spill] sm:$0xff] }
  0xc9   : > { %682 = vmatprep.mubr.f32.mxu1 %v681_v47  ;;  %2032 = vmatprep.subr.bf16.mxu1 %v2031_v58  ;;  %v2039_v6 = vpack.c.bf16 %v2738_v46, %v2736_v39  ;;  %v3369_v39 = vld [vmem:[#allocation18_spill] sm:$0xff]  ;;  %v2051_v63 = vpack.c.bf16 %v2783_v56, %v2781_v1  ;;  %v2055_v1 = vpack.c.bf16 %v2833_v24, %v2825_v30  ;;  %v3376_v56 = vld [vmem:[#allocation37_spill] sm:$0xff]  ;;  %v3378_v30 = vld [vmem:[#allocation39_spill] sm:$0xff] }
  0xca   : > { %v687_v14 = vand.u32 4294901760, %v686_v37  ;;  %1530 = vmatprep.mubr.f32.mxu0 %v3360_v57  ;;  %2034 = vmatpush1.bf16.msra.mxu1 %v2033_v44  ;;  %v2041_v44 = vpack.c.bf16 %v2745_v50, %v2743_v49  ;;  %v3370_v46 = vld [vmem:[#allocation22_spill] sm:$0xff]  ;;  %v2045_v49 = vpack.c.bf16 %v2771_v51, %v2769_v0  ;;  %v3371_v50 = vld [vmem:[#allocation32_spill] sm:$0xff]  ;;  %v2049_v0 = vpack.c.bf16 %v2804_v40, %v2802_v12  ;;  %v3373_v51 = vld [vmem:[#allocation35_spill] sm:$0xff] }
  0xcb   : > { %2036 = vmatprep.subr.bf16.mxu1 %v2035_v62  ;;  %v3372_v21 = vld [vmem:[#allocation34_spill] sm:$0xff]  ;;  %v2053_v12 = vpack.c.bf16 %v2817_v22, %v2788_v29  ;;  %v3375_v40 = vld [vmem:[#allocation36_spill] sm:$0xff]  ;;  %v2057_v29 = vpack.c.bf16 %v2841_v45, %v2837_v28  ;;  %v2059_v24 = vpack.c.bf16 %v2854_v38, %v2852_v34  ;;  %v2061_v28 = vpack.c.bf16 %v2871_v3, %v2861_v42  ;;  %v3379_v45 = vld [vmem:[#allocation19_spill] sm:$0xff] }
  0xcc   : > { %688 = vmatmul.mubr.f32.gmra.mrb[10].mxu1 %v687_v14  ;;  %1532 = vmatmul.mubr.f32.vlgmr.msra.gmra.mrb[0].mxu0 %v3363_v53  ;;  %v3377_v22 = vld [vmem:[#allocation38_spill] sm:$0xff]  ;;  %v2063_v34 = vpack.c.bf16 %v2879_v16, %v2877_v32  ;;  %v3381_v38 = vld [vmem:[#allocation41_spill] sm:$0xff]  ;;  %v2065_v15 = vpack.c.bf16 %v2890_v7, %v2888_v43  ;;  %v2067_v42 = vpack.c.bf16 %v2918_v18, %v2916_v55  ;;  %v3383_v3 = vld [vmem:[#allocation43_spill] sm:$0xff] }
  0xcd   : > { %939 = vmatprep.mubr.f32.mxu1 %v3360_v57  ;;  %2146 = vmatpush1.bf16.msra.mxu0 %v3364_v33  ;;  %v3382_v47 = vld [vmem:[#allocation42_spill] sm:$0xff]  ;;  %v2069_v35 = vpack.c.bf16 %v2924_v19, %v2920_v25  ;;  %v3384_v16 = vld [vmem:[#allocation44_spill] sm:$0xff]  ;;  %v3386_v32 = vld [vmem:[#allocation23_spill] sm:$0xff] }
  0xce   : > { %1538 = vmatprep.mubr.f32.mxu0 %v3365_v54  ;;  %2148 = vmatprep.subr.bf16.mxu0 %v3366_v13  ;;  %v3385_v7 = vld [vmem:[#allocation20_spill] sm:$0xff]  ;;  %v3387_v25 = vld [vmem:[#allocation45_spill] sm:$0xff]  ;;  %v3388_v19 = vld [vmem:[#allocation46_spill] sm:$0xff] }
  0xcf   : > { %v3391_v43 = vld [vmem:[#allocation49_spill] sm:$0xff]  ;;  %v3392_v55 = vld [vmem:[#allocation50_spill] sm:$0xff]  ;;  %v177_v18 = vld [vmem:[%s2596_s27] ss:$4 sm:$0x3] }
  0xd0   : > { %941 = vmatmul.mubr.f32.vlgmr.msra.gmra.mrb[0].mxu1 %v3363_v53  ;;  %1540 = vmatmul.mubr.f32.gmra.mrb[2].mxu0 %v3369_v39  ;;  %v3395_v37 = vld [vmem:[#allocation13_spill] sm:$0xff]  ;;  %v3396_v62 = vld [vmem:[#allocation14_spill] sm:$0xff] }
  0xd1   : > { %2038 = vmatpush1.bf16.msra.mxu1 %v2037_v20  ;;  %947 = vmatprep.mubr.f32.mxu1 %v3365_v54 }
  0xd2   : > { %2040 = vmatprep.subr.bf16.mxu1 %v2039_v6  ;;  %2150 = vmatpush1.bf16.msra.mxu0 %v3367_v17 }
  0xd3   : > { %2152 = vmatprep.subr.bf16.mxu0 %v3368_v59  ;;  %1546 = vmatprep.mubr.f32.mxu0 %v3370_v46 }
  0xd4   : > { %949 = vmatmul.mubr.f32.gmra.mrb[2].mxu1 %v3369_v39  ;;  %1548 = vmatmul.mubr.f32.gmra.mrb[4].mxu0 %v2977_v41 }
  0xd5   : > { %2042 = vmatpush1.bf16.msra.mxu1 %v2041_v44  ;;  %955 = vmatprep.mubr.f32.mxu1 %v3370_v46 }
  0xd6   : > { %2044 = vmatprep.subr.bf16.mxu1 %v2043_v8  ;;  %2154 = vmatpush1.bf16.msra.mxu0 %v3371_v50 }
  0xd7   : > { %2156 = vmatprep.subr.bf16.mxu0 %v3372_v21  ;;  %1554 = vmatprep.mubr.f32.mxu0 %v2989_v36 }
  0xd8   : > { %957 = vmatmul.mubr.f32.gmra.mrb[4].mxu1 %v2977_v41  ;;  %1556 = vmatmul.mubr.f32.gmra.mrb[6].mxu0 %v2993_v2 }
  0xd9   : > { %2046 = vmatpush1.bf16.msra.mxu1 %v2045_v49  ;;  %963 = vmatprep.mubr.f32.mxu1 %v2989_v36 }
  0xda   : > { %2048 = vmatprep.subr.bf16.mxu1 %v2047_v61  ;;  %2158 = vmatpush1.bf16.msra.mxu0 %v3373_v51 }
  0xdb   : > { %2160 = vmatprep.subr.bf16.mxu0 %v3374_v31  ;;  %1562 = vmatprep.mubr.f32.mxu0 %v3012_v60 }
  0xdc   : > { %965 = vmatmul.mubr.f32.gmra.mrb[6].mxu1 %v2993_v2  ;;  %1564 = vmatmul.mubr.f32.gmra.mrb[8].mxu0 %v3020_v10 }
  0xdd   : > { %2050 = vmatpush1.bf16.msra.mxu1 %v2049_v0  ;;  %971 = vmatprep.mubr.f32.mxu1 %v3012_v60 }
  0xde   : > { %2052 = vmatprep.subr.bf16.mxu1 %v2051_v63  ;;  %2162 = vmatpush1.bf16.msra.mxu0 %v3375_v40 }
  0xdf   : > { %2164 = vmatprep.subr.bf16.mxu0 %v3376_v56  ;;  %1570 = vmatprep.mubr.f32.mxu0 %v3034_v5 }
  0xe0   : > { %973 = vmatmul.mubr.f32.gmra.mrb[8].mxu1 %v3020_v10  ;;  %1572 = vmatmul.mubr.f32.gmra.mrb[10].mxu0 %v3043_v48 }
  0xe1   : > { %2054 = vmatpush1.bf16.msra.mxu1 %v2053_v12  ;;  %979 = vmatprep.mubr.f32.mxu1 %v3034_v5 }
  0xe2   : > { %2056 = vmatprep.subr.bf16.mxu1 %v2055_v1  ;;  %2166 = vmatpush1.bf16.msra.mxu0 %v3377_v22 }
  0xe3   : > { %2168 = vmatprep.subr.bf16.mxu0 %v3378_v30  ;;  %1679 = vmatprep.mubr.f32.mxu0 %v3360_v57 }
  0xe4   : > { %981 = vmatmul.mubr.f32.gmra.mrb[10].mxu1 %v3043_v48 }
  0xe5   : > { %2058 = vmatpush1.bf16.msra.mxu1 %v2057_v29  ;;  %1125 = vmatprep.mubr.f32.mxu1 %v3379_v45 }
  0xe6   : > { %2060 = vmatprep.subr.bf16.mxu1 %v2059_v24  ;;  %2170 = vmatpush1.bf16.msra.mxu0 %v3380_v52 }
  0xe7   : > { %2172 = vmatprep.subr.bf16.mxu0 %v3381_v38 }
  0xe9   : > { %2062 = vmatpush1.bf16.msra.mxu1 %v2061_v28 }
  0xea   : > { %2064 = vmatprep.subr.bf16.mxu1 %v2063_v34  ;;  %2174 = vmatpush1.bf16.msra.mxu0 %v3382_v47 }
  0xeb   : > { %2176 = vmatprep.subr.bf16.mxu0 %v3383_v3 }
  0xed   : > { %2066 = vmatpush1.bf16.msra.mxu1 %v2065_v15 }
  0xee   : > { %2068 = vmatprep.subr.bf16.mxu1 %v2067_v42  ;;  %2178 = vmatpush1.bf16.msra.mxu0 %v3384_v16 }
  0xf1   : > { %2070 = vmatpush1.bf16.msra.mxu1 %v2069_v35  ;;  %1681 = vmatmul.mubr.f32.vlgmr.msra.gmra.mrb[0].mxu0 %v3363_v53 }
  0xf2   : > { %1687 = vmatprep.mubr.f32.mxu0 %v3365_v54 }
  0xf4   : > { %1128 = vmatmul.mubr.f32.vlgmr.msra.gmra.mrb[0].mxu1 %v2625_v26  ;;  %v3389_v26 = vld [vmem:[#allocation47_spill] sm:$0xff] }
  0xf5   : > { %1135 = vmatprep.mubr.f32.mxu1 %v2664_v11  ;;  %1689 = vmatmul.mubr.f32.gmra.mrb[2].mxu0 %v3369_v39  ;;  %v3390_v11 = vld [vmem:[#allocation48_spill] sm:$0xff] }
  0xf6   : > { %1695 = vmatprep.mubr.f32.mxu0 %v3370_v46 }
  0xf8   : > { %1138 = vmatmul.mubr.f32.gmra.mrb[2].mxu1 %v3385_v7 }
  0xf9   : > { %1145 = vmatprep.mubr.f32.mxu1 %v3386_v32  ;;  %1697 = vmatmul.mubr.f32.gmra.mrb[4].mxu0 %v2977_v41  ;;  %v178_v41 = vmul.f32 7.999992, %v177_v18 }
  0xfa   : > { %1703 = vmatprep.mubr.f32.mxu0 %v2989_v36  ;;  %v3393_v36 = vld [vmem:[#allocation11_spill] sm:$0xff] }
  0xfc   : > { %1148 = vmatmul.mubr.f32.gmra.mrb[4].mxu1 %v3387_v25 }
  0xfd   : > { %1155 = vmatprep.mubr.f32.mxu1 %v3388_v19  ;;  %1705 = vmatmul.mubr.f32.gmra.mrb[6].mxu0 %v2993_v2  ;;  %v194_v2 = vrot.slane %v178_v41, %v3393_v36 }
  0xfe   : > { %1711 = vmatprep.mubr.f32.mxu0 %v3012_v60  ;;  %v3394_v60 = vld [vmem:[#allocation12_spill] sm:$0xff] }
  0xff   : > { %v198_v58 = vrot.slane %v178_v41, %v3394_v60  ;;  %v201_v9 = vsub.f32 %v194_v2, %v3395_v37 }
 0x100   : > { %1158 = vmatmul.mubr.f32.gmra.mrb[6].mxu1 %v3389_v26 }
 0x101   : > { %1165 = vmatprep.mubr.f32.mxu1 %v3390_v11  ;;  %1713 = vmatmul.mubr.f32.gmra.mrb[8].mxu0 %v3020_v10  ;;  %v203_v10 = vsub.f32 %v194_v2, %v3396_v62  ;;  %v204_v14 = vsub.f32 %v198_v58, %v3396_v62  ;;  %v205_v57 = vand.u32 2147483647, %v201_v9 }
 0x102   : > { %1719 = vmatprep.mubr.f32.mxu0 %v3034_v5  ;;  %v202_v5 = vsub.f32 %v198_v58, %v3395_v37 }
 0x103   : > { %v207_v4 = vand.u32 2147483647, %v203_v10  ;;  %v209_v53 = vsub.f32 1.0, %v205_v57 }
 0x104   : > { %1168 = vmatmul.mubr.f32.gmra.mrb[8].mxu1 %v3391_v43  ;;  %v206_v27 = vand.u32 2147483647, %v202_v5 }
 0x105   : > { %1175 = vmatprep.mubr.f32.mxu1 %v3392_v55  ;;  %1721 = vmatmul.mubr.f32.gmra.mrb[10].mxu0 %v3043_v48  ;;  %v208_v48 = vand.u32 2147483647, %v204_v14  ;;  %v211_v33 = vsub.f32 1.0, %v207_v4  ;;  %v213_v46 = vmax.f32 %v209_v53, 0.0 }
 0x106   : > { %v210_v54 = vsub.f32 1.0, %v206_v27 }
 0x107   : > { %v212_v13 = vsub.f32 1.0, %v208_v48  ;;  %v215_v49 = vmax.f32 %v211_v33, 0.0 }
 0x108   : > { %1178 = vmatmul.mubr.f32.gmra.mrb[10].mxu1 %v3050_v23  ;;  %v3166_v50 = vmax.f32 %v210_v54, 0.0 }
 0x109   : > { %v216_v21 = vmax.f32 %v212_v13, 0.0 }
 0x1c4   : > { %v1682_v20 = vpop.f32.mrb[0].mxu0 }
 0x1c5   : > { %v1684_v23 = vpop.f32.mrb[1].mxu0 }
 0x1c7   : > { %v1129_v6 = vpop.f32.mrb[0].mxu1 }
 0x1c8   : > { %v2179_v44 = vadd.f32 %v1682_v20, %v1129_v6  ;;  %v1131_v17 = vpop.f32.mrb[1].mxu1  ;;  %v1690_v8 = vpop.f32.mrb[2].mxu0 }
 0x1c9   : > { %v2180_v59 = vadd.f32 %v1684_v23, %v1131_v17  ;;  %v1692_v39 = vpop.f32.mrb[3].mxu0 }
 0x1ca   : > { %v1727_v40 = vmul.f32 %v2179_v44, %v213_v46 }
 0x1cb   : > { %v1139_v61 = vpop.f32.mrb[2].mxu1  ;;  %v1728_v56 = vmul.f32 %v2180_v59, %v3166_v50 }
 0x1cc   : > { %v2181_v0 = vadd.f32 %v1690_v8, %v1139_v61  ;;  %v1141_v51 = vpop.f32.mrb[3].mxu1  ;;  %v1698_v63 = vpop.f32.mrb[4].mxu0 }
 0x1cd   : > { %v2182_v31 = vadd.f32 %v1692_v39, %v1141_v51  ;;  %v1700_v12 = vpop.f32.mrb[5].mxu0 }
 0x1ce   : > { %v1729_v1 = vmul.f32 %v2181_v0, %v215_v49 }
 0x1cf   : > { %v1730_v29 = vmul.f32 %v2182_v31, %v216_v21  ;;  %v1149_v22 = vpop.f32.mrb[4].mxu1 }
 0x1d0   : > { %v1731_v24 = vadd.f32 %v1729_v1, %v1727_v40  ;;  %v2183_v30 = vadd.f32 %v1698_v63, %v1149_v22  ;;  %v1151_v28 = vpop.f32.mrb[5].mxu1  ;;  %v1706_v45 = vpop.f32.mrb[6].mxu0 }
 0x1d1   : > { %v1738_v52 = vadd.f32 %v1730_v29, %v1728_v56  ;;  %v2184_v34 = vadd.f32 %v1700_v12, %v1151_v28  ;;  %v1708_v38 = vpop.f32.mrb[7].mxu0  ;;  %v3397_v12 = vld [vmem:[#allocation15_spill] sm:$0xff] }
 0x1d2   : > { %v1732_v15 = vrot.slane %v1731_v24, 4  ;;  %v1768_v11 = vmul.f32 %v2183_v30, %v213_v46 }
 0x1d3   : > { %v1739_v47 = vrot.slane %v1738_v52, 4  ;;  %v1159_v42 = vpop.f32.mrb[6].mxu1  ;;  %v1769_v18 = vmul.f32 %v2184_v34, %v3166_v50 }
 0x1d4   : > { %v1733_v3 = vadd.f32 %v1732_v15, %v1731_v24  ;;  %v2185_v35 = vadd.f32 %v1706_v45, %v1159_v42  ;;  %v1161_v16 = vpop.f32.mrb[7].mxu1  ;;  %v1714_v7 = vpop.f32.mrb[8].mxu0  ;;  %v3398_v24 = vlaneseq }
 0x1d5   : > { %v1740_v32 = vadd.f32 %v1739_v47, %v1738_v52  ;;  %v2186_v25 = vadd.f32 %v1708_v38, %v1161_v16  ;;  %v1716_v19 = vpop.f32.mrb[9].mxu0 }
 0x1d6   : > { %v1734_v26 = vrot.slane %v1733_v3, 2  ;;  %v1770_v43 = vmul.f32 %v2185_v35, %v215_v49  ;;  %vm3173_vm1 = vcmp.lt.s32.totalorder %v3398_v24, 256 }
 0x1d7   : > { %v1741_v55 = vrot.slane %v1740_v32, 2  ;;  %v1771_v41 = vmul.f32 %v2186_v25, %v216_v21  ;;  %v1169_v36 = vpop.f32.mrb[8].mxu1 }
 0x1d8   : > { %v1735_v2 = vadd.f32 %v1734_v26, %v1733_v3  ;;  %v1772_v60 = vadd.f32 %v1770_v43, %v1768_v11  ;;  %v2187_v58 = vadd.f32 %v1714_v7, %v1169_v36  ;;  %v1171_v37 = vpop.f32.mrb[9].mxu1  ;;  %v1722_v9 = vpop.f32.mrb[10].mxu0 }
 0x1d9   : > { %v1742_v62 = vadd.f32 %v1741_v55, %v1740_v32  ;;  %v1779_v10 = vadd.f32 %v1771_v41, %v1769_v18  ;;  %v2188_v5 = vadd.f32 %v1716_v19, %v1171_v37  ;;  %v1724_v14 = vpop.f32.mrb[11].mxu0 }
 0x1da   : > { %v1736_v57 = vrot.slane %v1735_v2, 1  ;;  %v1773_v4 = vrot.slane %v1772_v60, 4  ;;  %v1806_v8 = vmul.f32 %v2187_v58, %v213_v46 }
 0x1db   : > { %v1743_v27 = vrot.slane %v1742_v62, 1  ;;  %v1780_v48 = vrot.slane %v1779_v10, 4  ;;  %v1179_v20 = vpop.f32.mrb[10].mxu1  ;;  %v1807_v0 = vmul.f32 %v2188_v5, %v3166_v50 }
 0x1dc   : > { %v1737_v23 = vadd.f32 %v1736_v57, %v1735_v2  ;;  %v1774_v53 = vadd.f32 %v1773_v4, %v1772_v60  ;;  %v2189_v33 = vadd.f32 %v1722_v9, %v1179_v20  ;;  %v1181_v6 = vpop.f32.mrb[11].mxu1 }
 0x1dd   : > { %v1744_v54 = vadd.f32 %v1743_v27, %v1742_v62  ;;  %v1781_v13 = vadd.f32 %v1780_v48, %v1779_v10  ;;  %v2190_v44 = vadd.f32 %v1724_v14, %v1181_v6 }
 0x1de   : > { %v1775_v17 = vrot.slane %v1774_v53, 2  ;;  %v1808_v59 = vmul.f32 %v2189_v33, %v215_v49 }
 0x1df   : > { %v1747_v39 = vcombine.low %v1737_v23, %v1744_v54  ;;  %v1782_v61 = vrot.slane %v1781_v13, 2  ;;  %v1809_v51 = vmul.f32 %v2190_v44, %v216_v21 }
 0x1e0   : > { %v1776_v63 = vadd.f32 %v1775_v17, %v1774_v53  ;;  %v1810_v31 = vadd.f32 %v1808_v59, %v1806_v8 }
 0x1e1   : > { %v1754_v40 = vrot.slane %v1747_v39, %v3397_v12  ;;  %v1783_v1 = vadd.f32 %v1782_v61, %v1781_v13  ;;  %v1817_v56 = vadd.f32 %v1809_v51, %v1807_v0 }
 0x1e2   : > { %v1777_v29 = vrot.slane %v1776_v63, 1  ;;  %v1811_v22 = vrot.slane %v1810_v31, 4 }
 0x1e3   : > { %v1761_v46 = vrot.slane %v1754_v40, %v3397_v12  ;;  %v1784_v49 = vrot.slane %v1783_v1, 1  ;;  %v1818_v28 = vrot.slane %v1817_v56, 4 }
 0x1e4   : > { %v1778_v50 = vadd.f32 %v1777_v29, %v1776_v63  ;;  %v1812_v21 = vadd.f32 %v1811_v22, %v1810_v31 }
 0x1e5   : > { %v1785_v45 = vadd.f32 %v1784_v49, %v1783_v1  ;;  %v1819_v52 = vadd.f32 %v1818_v28, %v1817_v56  ;;  %1767 = vst.msk [vmem:[%s174_s15] ss:$4 sm:$0x3] %vm3173_vm1, %v1761_v46 }
 0x1e6   : > { %v1813_v34 = vrot.slane %v1812_v21, 2 }
 0x1e7   : > { %v1788_v38 = vcombine.low %v1778_v50, %v1785_v45  ;;  %v1820_v15 = vrot.slane %v1819_v52, 2 }
 0x1e8   : > { %v1814_v47 = vadd.f32 %v1813_v34, %v1812_v21 }
 0x1e9   : > { %v1795_v42 = vrot.slane %v1788_v38, %v3397_v12  ;;  %v1821_v3 = vadd.f32 %v1820_v15, %v1819_v52 }
 0x1ea   : > { %v1815_v35 = vrot.slane %v1814_v47, 1 }
 0x1eb   : > { %v1802_v16 = vrot.slane %v1795_v42, %v3397_v12  ;;  %v1822_v7 = vrot.slane %v1821_v3, 1 }
 0x1ec   : > { %v1816_v32 = vadd.f32 %v1815_v35, %v1814_v47 }
 0x1ed   : > { %v1823_v25 = vadd.f32 %v1822_v7, %v1821_v3  ;;  %1954 = vst.msk [vmem:[%s174_s15 + $0x1] ss:$4 sm:$0x3] %vm3173_vm1, %v1802_v16 }
 0x1ef   : > { %v1826_v19 = vcombine.low %v1816_v32, %v1823_v25 }
 0x1f1   : > { %v1833_v26 = vrot.slane %v1826_v19, %v3397_v12 }
 0x1f3   : > { %v1840_v11 = vrot.slane %v1833_v26, %v3397_v12 }
 0x1f5   : > { %1955 = vst.msk [vmem:[%s174_s15 + $0x2] ss:$4 sm:$0x3] %vm3173_vm1, %v1840_v11 }
 0x1f6   : > { %2370 = shalt.err (!%p2367_p7)
}
 0x1f7   : > { %s2371_s6 = scalar_lea.hbm %s3192_s29, 128  ;;  %s2375_s24 = scalar_lea.hbm %s3240_s2, 256 }
 0x1f8   : > { %p2372_p9 = scmp.ne.s32.totalorder %s3192_s29, %s2371_s6  ;;  %p2376_p0 = scmp.lt.u32.totalorder %s3192_s29, %s3240_s2 }
 0x1f9   : > { %p2377_p1 = scmp.lt.u32.totalorder %s2375_s24, %s2371_s6  ;;  %p2379_p4 = scmp.lt.u32.totalorder %s2371_s6, %s3192_s29 }
 0x1fa   : > { %p2373_p2 = pnand %p2372_p9, %p2541_p12 }
 0x1fb   : > { %p2378_p11 = por %p2377_p1, %p2376_p0 }
 0x1fc   : > { %p2374_p5 = pneg %p2373_p2 }
 0x1fd   : > { %p2380_p6 = por %p2379_p4, %p2378_p11 }
 0x1ff   : > { %p2381_p8 = pnand %p2380_p6, %p2374_p5 }
 0x201   : > { %2384 = shalt.err (!%p2381_p8)
}
 0x202   : > { %2245 = dma.vmem_to_hbm [thread:$0]  (%p2541_p12), %s3194_s22, 128, %s3192_s29, %s1845_s30  }
 0x203 PF: > { %s1871_s26 = sand.u32 1, %s2415_s9   ;;  %p3401_p10 = scmp.ne.s32.totalorder %s3297_s16, 0 }
 0x204   : > { %p3402_p13 = scmp.ge.s32.totalorder %s2427_s12, 2  ;;  %s1872_s19 = scalar_lea.sflag [#allocation4], %s1871_s26 }
 0x206   : > { %p2256_p3 = pnand %p3402_p13, %p3401_p10 }
 0x208   : > { %2410 = dma.done.wait (!%p2256_p3), %s1872_s19, 128  }
 0x209   : > { %2412 = vsyncadd (!%p2256_p3), %s1872_s19, 4294967168  ;;  %p16_p7 = scmp.ge.s32.totalorder %s2506_s21, 4   ;;  %s3403_s9 = smov %s2419_s10 }
 0x20a   : > { %s3404_s10 = smov %s2423_s11  ;;  %s3405_s11 = smov %s2537_s8 }
 0x20b   : > { %s3406_s12 = smov %s2506_s21  ;;  %18 = sbr.rel (!%p16_p7) target bundleno = 6 (0x6), region = 82 }
 0x212   :  { %1877 = vsyncpa [#allocation3], 1 }
 0x213   :  { %1879 = vsyncpa [#allocation3 + $0x1], 1 }
 0x214   :  { %1880 = vsyncpa [#allocation6], 1 }
 0x215   :  { %1882 = vsyncpa [#allocation6 + $0x1], 1 }
 0x216   :  { %1883 = vsyncpa [#allocation4], 1 }
 0x217   :  { %1885 = vsyncpa [#allocation4 + $0x1], 1 }

</bundles_post_ra>
